<compile_context>
chip_gen: v5e
topology: v5e:2x2
jax: 0.10.0
libtpu: 0.0.40
codegen_flags: <defaults>
</compile_context>

<pallas_src>
import numpy as np
from functools import partial

import jax
import jax.numpy as jnp
from jax.experimental import pallas as pl
from jax.experimental.pallas import tpu as pltpu

# ---------------- configuration (mirrors BatchNorm.__init__ defaults) ----------------
RS = [(4, 1), (3, 3), (2, 5)]        # (multiplicity, irrep dimension)
EPS = 1e-5
MOMENTUM = 0.1
AFFINE = True
REDUCE = "mean"                       # only the default 'mean' is implemented
NORMALIZATION = "component"           # 'component' or 'norm'

DIM = sum(m * d for m, d in RS)                      # 23
NUM_SCALAR = sum(m for m, d in RS if d == 1)         # 4
NUM_FEATURES = sum(m for m, d in RS)                 # 9

FOLD = 128                            # rows folded into the lane axis (C = FOLD*DIM = 2944)
FUSED_MAX_BYTES = 1 << 20             # use the fused single-pass kernel when |x| (f32) <= 1 MiB

# TODO(synk): reduce='max' needs a per-tile running-max accumulator over per-sample norms;
# only the module default reduce='mean' is wired into the kernels.
assert REDUCE == "mean"


def _static_metadata(rs):
    """Static per-column metadata: owning irrep copy, scalar columns, scaled segment matrix."""
    copy_of_col, scalar_cols, inv_d_of_copy = [], [], []
    col = 0
    cpy = 0
    for m, d in rs:
        for _ in range(m):
            for _ in range(d):
                copy_of_col.append(cpy)
                if d == 1:
                    scalar_cols.append(col)
                col += 1
            inv_d_of_copy.append(1.0 / d if NORMALIZATION == "component" else 1.0)
            cpy += 1
    g_scaled = np.zeros((col, cpy), np.float32)       # [DIM, NUM_FEATURES]
    for c_, cp in enumerate(copy_of_col):
        g_scaled[c_, cp] = inv_d_of_copy[cp]
    return (np.asarray(copy_of_col, np.int32),
            np.asarray(scalar_cols, np.int32),
            g_scaled)


COPY_OF_COL, SCALAR_COLS, G_SCALED = _static_metadata(RS)

# 0/1 selector masks used by the fused kernel (exact f32 broadcast-multiply-reduce; no MXU).
GATH_MASK = np.zeros((NUM_SCALAR, DIM), np.float32)          # scalar-column selector
GATH_MASK[np.arange(NUM_SCALAR), SCALAR_COLS] = 1.0
GSC_MASK = np.ascontiguousarray(G_SCALED.T)                  # [NUM_FEATURES, DIM], 1/d per col
CEXP_MASK = np.zeros((NUM_FEATURES, DIM), np.float32)        # copy -> column expander
CEXP_MASK[COPY_OF_COL, np.arange(DIM)] = 1.0


# ------------------------------------ kernels ------------------------------------------
def _fused_kernel(x_ref, rm_ref, rv_ref, b_ref, gath_ref, gsc_ref, cexp_ref,
                  out_ref, rm_out_ref, rv_out_ref, *, n_true):
    """Single-pass: stats + O(dim) finalize + normalize, x resident in VMEM."""
    xf = x_ref[...]
    if xf.dtype != jnp.float32:
        xf = xf.astype(jnp.float32)
    nf = jnp.float32(n_true)

    csum = jnp.sum(xf, axis=0, keepdims=True)                 # [1, DIM]
    csq = jnp.sum(xf * xf, axis=0, keepdims=True)             # [1, DIM]

    gath = gath_ref[...]                                      # [NS, DIM] 0/1
    mean_sc = jnp.sum(csum * gath, axis=1, keepdims=True) / nf            # [NS, 1]
    new_rm = (1.0 - MOMENTUM) * rm_ref[...] + MOMENTUM * mean_sc          # rolled mean
    mu = jnp.sum(new_rm * gath, axis=0, keepdims=True)                    # [1, DIM]

    # sum((x - mu)^2) per column, then per-copy (scaled) contraction over the d components.
    csq_c = csq - 2.0 * mu * csum + nf * mu * mu                          # [1, DIM]
    bvar = jnp.sum(csq_c * gsc_ref[...], axis=1, keepdims=True) / nf      # [NF, 1]
    new_rv = (1.0 - MOMENTUM) * rv_ref[...] + MOMENTUM * bvar             # rolled var

    inv = jax.lax.rsqrt(new_rv + EPS)                                     # [NF, 1]
    scale = jnp.sum(inv * cexp_ref[...], axis=0, keepdims=True)           # [1, DIM]
    if AFFINE:
        bias_cols = jnp.sum(b_ref[...] * gath, axis=0, keepdims=True)     # [1, DIM]
    else:
        bias_cols = jnp.zeros_like(mu)
    shift = bias_cols - mu * scale

    out_ref[...] = (xf * scale + shift).astype(out_ref.dtype)
    rm_out_ref[...] = new_rm
    rv_out_ref[...] = new_rv


def _stats_kernel(x_ref, sum_ref, sumsq_ref):
    """Pass 1: accumulate per-(folded-)column sum / sum-of-squares across row tiles.

    Output blocks are (8, c) per grid-parallel split (only row 0 is used; the other rows
    stay zero) so the block satisfies the (8, 128) tiling rule."""
    @pl.when(pl.program_id(1) == 0)
    def _():
        sum_ref[...] = jnp.zeros_like(sum_ref)
        sumsq_ref[...] = jnp.zeros_like(sumsq_ref)

    xf = x_ref[...]
    if xf.dtype != jnp.float32:
        xf = xf.astype(jnp.float32)
    sum_ref[0:1, :] = sum_ref[0:1, :] + jnp.sum(xf, axis=0, keepdims=True)
    sumsq_ref[0:1, :] = sumsq_ref[0:1, :] + jnp.sum(xf * xf, axis=0, keepdims=True)


def _norm_kernel(scale_ref, shift_ref, x_ref, out_ref):
    """Pass 2: out = x * scale + shift (all irrep logic pre-folded into scale/shift)."""
    xf = x_ref[...]
    if xf.dtype != jnp.float32:
        xf = xf.astype(jnp.float32)
    out_ref[...] = (xf * scale_ref[...] + shift_ref[...]).astype(out_ref.dtype)


# ---------------------------------- tiling helpers --------------------------------------
_TARGET_TILE_BYTES = None


def _target_tile_bytes():
    """~6 MiB row tiles on v7x (64 MiB VMEM/TC, 3.2 TB/s HBM), ~4 MiB on v5e/v6e."""
    global _TARGET_TILE_BYTES
    if _TARGET_TILE_BYTES is None:
        try:
            vmem = int(pltpu.get_tpu_info().vmem_capacity_bytes)
            _TARGET_TILE_BYTES = (6 << 20) if vmem <= (64 << 20) else (4 << 20)
        except Exception:
            _TARGET_TILE_BYTES = 4 << 20
    return _TARGET_TILE_BYTES


def _sublane(dtype):
    """Row-tile alignment matching the dtype's sublane packing."""
    return {4: 8, 2: 16, 1: 32}.get(jnp.dtype(dtype).itemsize, 8)


def _round_up(a, b):
    return -(-a // b) * b


# ------------------------------------ wrapper ------------------------------------------
@partial(jax.jit, static_argnames=("row_tile", "force_two_pass"))
def batchnorm_pallas(x, running_mean, running_var, bias, *, row_tile=None,
                     force_two_pass=False):
    *size, dim = x.shape
    assert dim == DIM
    n = int(np.prod(size)) if size else 1
    in_dtype = x.dtype
    itemsize = jnp.dtype(in_dtype).itemsize
    x2 = x.reshape(n, DIM)

    rm32 = running_mean.astype(jnp.float32)
    rv32 = running_var.astype(jnp.float32)
    b32 = bias.astype(jnp.float32)

    # -------- fused single-pass path: x VMEM-resident, one dispatch, 2x|x| HBM traffic ----
    if (not force_two_pass) and n * DIM * 4 <= FUSED_MAX_BYTES:
        buf = _round_up(n, 8) * 128 * 4          # lane-padded f32 footprint of one buffer
        limit = int(min(46 << 20, 5 * buf + (8 << 20)))
        out2, rm_o, rv_o = pl.pallas_call(
            partial(_fused_kernel, n_true=float(n)),
            out_shape=(jax.ShapeDtypeStruct((n, DIM), in_dtype),
                       jax.ShapeDtypeStruct((NUM_SCALAR, 1), jnp.float32),
                       jax.ShapeDtypeStruct((NUM_FEATURES, 1), jnp.float32)),
            compiler_params=pltpu.CompilerParams(vmem_limit_bytes=limit),
        )(x2,
          rm32.reshape(NUM_SCALAR, 1),
          rv32.reshape(NUM_FEATURES, 1),
          b32.reshape(NUM_SCALAR, 1),
          jnp.asarray(GATH_MASK), jnp.asarray(GSC_MASK), jnp.asarray(CEXP_MASK))
        return out2.reshape(x.shape), rm_o.reshape(-1), rv_o.reshape(-1)

    # ----------------------- streaming two-pass path (large inputs) -----------------------
    fold = FOLD
    c = fold * DIM                                     # 2944, an exact multiple of 128
    sub = _sublane(in_dtype)
    row_bytes = c * itemsize

    r0 = pl.cdiv(n, fold)
    r1 = _round_up(max(r0, sub), sub)
    if row_tile is not None:
        tr = int(row_tile)
    else:
        tr = max(sub, (_target_tile_bytes() // row_bytes) // sub * sub)
        tr = min(tr, r1)
    # keep the grid length even when it is > 1 (megacore balance / 2-way stats split on v7x)
    r_pad = _round_up(r1, 2 * tr) if r1 > tr else _round_up(r1, tr)
    n_pad = r_pad * fold
    if n_pad > n:
        # zero rows add 0 to sum/sumsq and the finalize divides by the true n -> free.
        x2 = jnp.pad(x2, ((0, n_pad - n), (0, 0)))
    xf = x2.reshape(r_pad, c)                          # free row-major reshape, lane-dense

    steps = r_pad // tr
    splits = 2 if (steps % 2 == 0 and steps >= 2) else 1
    steps_ps = steps // splits

    in_blk = tr * row_bytes
    stat_blk = 8 * c * 4
    limit1 = int(min(48 << 20, 2 * in_blk + 4 * stat_blk + (8 << 20)))
    limit2 = int(min(48 << 20, 4 * in_blk + 4 * c * 4 + (8 << 20)))

    # ---------------- pass 1: streaming column sums (per-split resident accumulators) ------
    col_sum_f, col_sumsq_f = pl.pallas_call(
        _stats_kernel,
        out_shape=(jax.ShapeDtypeStruct((8 * splits, c), jnp.float32),
                   jax.ShapeDtypeStruct((8 * splits, c), jnp.float32)),
        grid_spec=pltpu.PrefetchScalarGridSpec(
            num_scalar_prefetch=0,
            grid=(splits, steps_ps),
            in_specs=[pl.BlockSpec((tr, c), lambda p, i, _s=steps_ps: (p * _s + i, 0))],
            out_specs=(pl.BlockSpec((8, c), lambda p, i: (p, 0)),
                       pl.BlockSpec((8, c), lambda p, i: (p, 0)))),
        compiler_params=pltpu.CompilerParams(
            dimension_semantics=("parallel", "arbitrary"),
            vmem_limit_bytes=limit1),
    )(xf)

    # ------------- tiny O(dim) statistics finalize (plain JAX, negligible) ---------------
    col_sum = col_sum_f.reshape(-1, DIM).sum(axis=0)           # [DIM]
    col_sumsq = col_sumsq_f.reshape(-1, DIM).sum(axis=0)       # [DIM]
    nf = jnp.float32(n)

    batch_mean_scalar = col_sum[SCALAR_COLS] / nf                          # [NUM_SCALAR]
    new_rm = (1.0 - MOMENTUM) * rm32 + MOMENTUM * batch_mean_scalar        # rolled mean
    mu_cols = jnp.zeros((DIM,), jnp.float32).at[SCALAR_COLS].set(new_rm)   # 0 for d>1 cols

    # sum((x - mu)^2) per column, then per-copy mean over the d components (component norm).
    csumsq = col_sumsq - 2.0 * mu_cols * col_sum + nf * mu_cols * mu_cols
    batch_var = jnp.sum((csumsq / nf)[:, None] * jnp.asarray(G_SCALED), axis=0)  # [NF]
    new_rv = (1.0 - MOMENTUM) * rv32 + MOMENTUM * batch_var                # rolled var

    inv = jax.lax.rsqrt(new_rv + EPS)                                      # [NUM_FEATURES]
    # self.weight is never applied to the output in the reference module (dead code).
    inv_cols = inv[jnp.asarray(COPY_OF_COL)]                               # [DIM]
    if AFFINE:
        bias_cols = jnp.zeros((DIM,), jnp.float32).at[SCALAR_COLS].set(b32)
    else:
        bias_cols = jnp.zeros((DIM,), jnp.float32)

    scale_cols = inv_cols                                                  # out = x*scale + shift
    shift_cols = bias_cols - mu_cols * inv_cols
    scale_f = jnp.tile(scale_cols, fold)[None, :]                          # [1, C]
    shift_f = jnp.tile(shift_cols, fold)[None, :]                          # [1, C]

    # --------------------- pass 2: per-column affine, native dtype out -------------------
    out_folded = pl.pallas_call(
        _norm_kernel,
        out_shape=jax.ShapeDtypeStruct((r_pad, c), in_dtype),
        grid_spec=pltpu.PrefetchScalarGridSpec(
            num_scalar_prefetch=0,
            grid=(steps,),
            in_specs=[pl.BlockSpec((1, c), lambda i: (0, 0)),    # scale: DMA'd once
                      pl.BlockSpec((1, c), lambda i: (0, 0)),    # shift: DMA'd once
                      pl.BlockSpec((tr, c), lambda i: (i, 0))],
            out_specs=pl.BlockSpec((tr, c), lambda i: (i, 0))),
        compiler_params=pltpu.CompilerParams(
            dimension_semantics=("parallel",),
            vmem_limit_bytes=limit2),
    )(scale_f, shift_f, xf)

    out = out_folded.reshape(n_pad, DIM)[:n].reshape(x.shape)
    # TODO(synk): eval-mode path (use running stats directly, no roll-average) not wired up;
    # this reproduces the training-mode forward, which is the module's default state.
    return out, new_rm, new_rv


# ------------------------ pure-JAX reference (mirrors the torch code) -------------------
def batchnorm_ref(x, running_mean, running_var, bias):
    *size, dim = x.shape
    x2 = x.reshape(-1, dim).astype(jnp.float32)
    fields, new_means, new_vars = [], [], []
    ix = irm = irv = ib = 0
    for m, d in RS:
        field = x2[:, ix:ix + m * d].reshape(-1, m, d)
        ix += m * d
        if d == 1:
            fmean = jnp.mean(field, axis=0).reshape(m)
            fmean = (1 - MOMENTUM) * running_mean[irm:irm + m] + MOMENTUM * fmean
            new_means.append(fmean)
            irm += m
            field = field - fmean.reshape(m, 1)
        if NORMALIZATION == "component":
            fnorm = jnp.mean(field ** 2, axis=-1)
        else:
            fnorm = jnp.sum(field ** 2, axis=-1)
        fnorm = jnp.mean(fnorm, axis=0) if REDUCE == "mean" else jnp.max(fnorm, axis=0)
        fnorm = (1 - MOMENTUM) * running_var[irv:irv + m] + MOMENTUM * fnorm
        new_vars.append(fnorm)
        irv += m
        inv = (fnorm + EPS) ** -0.5
        field = field * inv.reshape(m, 1)
        if AFFINE and d == 1:
            field = field + bias[ib:ib + m].reshape(m, 1)
            ib += m
        fields.append(field.reshape(-1, m * d))
    out = jnp.concatenate(fields, axis=-1).reshape(*size, dim)
    return out, jnp.concatenate(new_means), jnp.concatenate(new_vars)


# ----------------------------------------- main ----------------------------------------
if __name__ == "__main__":
    key = jax.random.PRNGKey(0)

    running_mean = jnp.zeros((NUM_SCALAR,), jnp.float32)
    running_var = jnp.ones((NUM_FEATURES,), jnp.float32)
    weight = jnp.ones((NUM_FEATURES,), jnp.float32)  # present in the module; no effect on output
    bias = 0.1 * jnp.arange(NUM_SCALAR, dtype=jnp.float32)

    # --- check 1: small input -> fused single-pass VMEM-resident kernel ---
    x = jax.random.normal(key, (2, 16, 16, DIM), dtype=jnp.float32)
    out, rm1, rv1 = batchnorm_pallas(x, running_mean, running_var, bias)
    out = jax.block_until_ready(out)
    ro, rrm, rrv = batchnorm_ref(x, running_mean, running_var, bias)
    np.testing.assert_allclose(np.asarray(out), np.asarray(ro), rtol=1e-4, atol=1e-4)
    np.testing.assert_allclose(np.asarray(rm1), np.asarray(rrm), rtol=1e-5, atol=1e-6)
    np.testing.assert_allclose(np.asarray(rv1), np.asarray(rrv), rtol=1e-4, atol=1e-5)

    # --- check 2: forced streaming two-pass path with multiple row tiles and the 2-way
    #              parallel stats accumulators (megacore split on v7x) ---
    x2 = jax.random.normal(jax.random.PRNGKey(1), (4, 32, 32, DIM), dtype=jnp.float32)
    out2, rm2, rv2 = batchnorm_pallas(x2, running_mean, running_var, bias,
                                      row_tile=8, force_two_pass=True)
    out2 = jax.block_until_ready(out2)
    ro2, rrm2, rrv2 = batchnorm_ref(x2, running_mean, running_var, bias)
    np.testing.assert_allclose(np.asarray(out2), np.asarray(ro2), rtol=1e-4, atol=1e-4)
    np.testing.assert_allclose(np.asarray(rm2), np.asarray(rrm2), rtol=1e-5, atol=1e-6)
    np.testing.assert_allclose(np.asarray(rv2), np.asarray(rrv2), rtol=1e-4, atol=1e-5)

    # --- check 3: default dispatch lands on the two-pass path (x too big for fused) ---
    x3 = jax.random.normal(jax.random.PRNGKey(2), (16, 32, 32, DIM), dtype=jnp.float32)
    out3, rm3, rv3 = batchnorm_pallas(x3, running_mean, running_var, bias)
    out3 = jax.block_until_ready(out3)
    ro3, rrm3, rrv3 = batchnorm_ref(x3, running_mean, running_var, bias)
    np.testing.assert_allclose(np.asarray(out3), np.asarray(ro3), rtol=1e-4, atol=1e-4)
    np.testing.assert_allclose(np.asarray(rm3), np.asarray(rrm3), rtol=1e-5, atol=1e-6)
    np.testing.assert_allclose(np.asarray(rv3), np.asarray(rrv3), rtol=1e-4, atol=1e-5)

    print("KERNEL_OK")
</pallas_src>

<mosaic_0001>
module attributes {stable_mosaic.version = 11 : i64} {
  func.func @_fused_kernel(%arg0: memref<512x23xf32, #tpu.memory_space<vmem>>, %arg1: memref<4x1xf32, #tpu.memory_space<vmem>>, %arg2: memref<9x1xf32, #tpu.memory_space<vmem>>, %arg3: memref<4x1xf32, #tpu.memory_space<vmem>>, %arg4: memref<4x23xf32, #tpu.memory_space<vmem>>, %arg5: memref<9x23xf32, #tpu.memory_space<vmem>>, %arg6: memref<9x23xf32, #tpu.memory_space<vmem>>, %arg7: memref<512x23xf32, #tpu.memory_space<vmem>>, %arg8: memref<4x1xf32, #tpu.memory_space<vmem>>, %arg9: memref<9x1xf32, #tpu.memory_space<vmem>>) attributes {dimension_semantics = [], scalar_prefetch = 0 : i64, scratch_operands = 0 : i64, tpu.core_type = #tpu.core_type<tc>} {
    %c0 = arith.constant 0 : index
    %c0_0 = arith.constant 0 : index
    %0 = vector.load %arg0[%c0, %c0_0] : memref<512x23xf32, #tpu.memory_space<vmem>>, vector<512x23xf32>
    %cst = arith.constant dense<0.000000e+00> : vector<23xf32>
    %1 = vector.multi_reduction <add>, %0, %cst [0] : vector<512x23xf32> to vector<23xf32>
    %2 = vector.shape_cast %1 : vector<23xf32> to vector<1x23xf32>
    %3 = arith.mulf %0, %0 : vector<512x23xf32>
    %cst_1 = arith.constant dense<0.000000e+00> : vector<23xf32>
    %4 = vector.multi_reduction <add>, %3, %cst_1 [0] : vector<512x23xf32> to vector<23xf32>
    %5 = vector.shape_cast %4 : vector<23xf32> to vector<1x23xf32>
    %c0_2 = arith.constant 0 : index
    %c0_3 = arith.constant 0 : index
    %6 = vector.load %arg4[%c0_2, %c0_3] : memref<4x23xf32, #tpu.memory_space<vmem>>, vector<4x23xf32>
    %7 = vector.broadcast %2 : vector<1x23xf32> to vector<4x23xf32>
    %8 = arith.mulf %7, %6 : vector<4x23xf32>
    %cst_4 = arith.constant dense<0.000000e+00> : vector<4xf32>
    %9 = vector.multi_reduction <add>, %8, %cst_4 [1] : vector<4x23xf32> to vector<4xf32>
    %10 = vector.shape_cast %9 : vector<4xf32> to vector<4x1xf32>
    %cst_5 = arith.constant 5.120000e+02 : f32
    %11 = vector.broadcast %cst_5 : f32 to vector<4x1xf32>
    %12 = arith.divf %10, %11 : vector<4x1xf32>
    %c0_6 = arith.constant 0 : index
    %c0_7 = arith.constant 0 : index
    %13 = vector.load %arg1[%c0_6, %c0_7] : memref<4x1xf32, #tpu.memory_space<vmem>>, vector<4x1xf32>
    %cst_8 = arith.constant 0.899999976 : f32
    %14 = vector.broadcast %cst_8 : f32 to vector<4x1xf32>
    %15 = arith.mulf %14, %13 : vector<4x1xf32>
    %cst_9 = arith.constant 1.000000e-01 : f32
    %16 = vector.broadcast %cst_9 : f32 to vector<4x1xf32>
    %17 = arith.mulf %16, %12 : vector<4x1xf32>
    %18 = arith.addf %15, %17 : vector<4x1xf32>
    %19 = vector.broadcast %18 : vector<4x1xf32> to vector<4x23xf32>
    %20 = arith.mulf %19, %6 : vector<4x23xf32>
    %cst_10 = arith.constant dense<0.000000e+00> : vector<23xf32>
    %21 = vector.multi_reduction <add>, %20, %cst_10 [0] : vector<4x23xf32> to vector<23xf32>
    %22 = vector.shape_cast %21 : vector<23xf32> to vector<1x23xf32>
    %cst_11 = arith.constant 2.000000e+00 : f32
    %23 = vector.broadcast %cst_11 : f32 to vector<1x23xf32>
    %24 = arith.mulf %23, %22 : vector<1x23xf32>
    %25 = arith.mulf %24, %2 : vector<1x23xf32>
    %26 = arith.subf %5, %25 : vector<1x23xf32>
    %cst_12 = arith.constant 5.120000e+02 : f32
    %27 = vector.broadcast %cst_12 : f32 to vector<1x23xf32>
    %28 = arith.mulf %27, %22 : vector<1x23xf32>
    %29 = arith.mulf %28, %22 : vector<1x23xf32>
    %30 = arith.addf %26, %29 : vector<1x23xf32>
    %c0_13 = arith.constant 0 : index
    %c0_14 = arith.constant 0 : index
    %31 = vector.load %arg5[%c0_13, %c0_14] : memref<9x23xf32, #tpu.memory_space<vmem>>, vector<9x23xf32>
    %32 = vector.broadcast %30 : vector<1x23xf32> to vector<9x23xf32>
    %33 = arith.mulf %32, %31 : vector<9x23xf32>
    %cst_15 = arith.constant dense<0.000000e+00> : vector<9xf32>
    %34 = vector.multi_reduction <add>, %33, %cst_15 [1] : vector<9x23xf32> to vector<9xf32>
    %35 = vector.shape_cast %34 : vector<9xf32> to vector<9x1xf32>
    %cst_16 = arith.constant 5.120000e+02 : f32
    %36 = vector.broadcast %cst_16 : f32 to vector<9x1xf32>
    %37 = arith.divf %35, %36 : vector<9x1xf32>
    %c0_17 = arith.constant 0 : index
    %c0_18 = arith.constant 0 : index
    %38 = vector.load %arg2[%c0_17, %c0_18] : memref<9x1xf32, #tpu.memory_space<vmem>>, vector<9x1xf32>
    %cst_19 = arith.constant 0.899999976 : f32
    %39 = vector.broadcast %cst_19 : f32 to vector<9x1xf32>
    %40 = arith.mulf %39, %38 : vector<9x1xf32>
    %cst_20 = arith.constant 1.000000e-01 : f32
    %41 = vector.broadcast %cst_20 : f32 to vector<9x1xf32>
    %42 = arith.mulf %41, %37 : vector<9x1xf32>
    %43 = arith.addf %40, %42 : vector<9x1xf32>
    %cst_21 = arith.constant 9.99999974E-6 : f32
    %44 = vector.broadcast %cst_21 : f32 to vector<9x1xf32>
    %45 = arith.addf %43, %44 : vector<9x1xf32>
    %46 = math.rsqrt %45 : vector<9x1xf32>
    %c0_22 = arith.constant 0 : index
    %c0_23 = arith.constant 0 : index
    %47 = vector.load %arg6[%c0_22, %c0_23] : memref<9x23xf32, #tpu.memory_space<vmem>>, vector<9x23xf32>
    %48 = vector.broadcast %46 : vector<9x1xf32> to vector<9x23xf32>
    %49 = arith.mulf %48, %47 : vector<9x23xf32>
    %cst_24 = arith.constant dense<0.000000e+00> : vector<23xf32>
    %50 = vector.multi_reduction <add>, %49, %cst_24 [0] : vector<9x23xf32> to vector<23xf32>
    %51 = vector.shape_cast %50 : vector<23xf32> to vector<1x23xf32>
    %c0_25 = arith.constant 0 : index
    %c0_26 = arith.constant 0 : index
    %52 = vector.load %arg3[%c0_25, %c0_26] : memref<4x1xf32, #tpu.memory_space<vmem>>, vector<4x1xf32>
    %53 = vector.broadcast %52 : vector<4x1xf32> to vector<4x23xf32>
    %54 = arith.mulf %53, %6 : vector<4x23xf32>
    %cst_27 = arith.constant dense<0.000000e+00> : vector<23xf32>
    %55 = vector.multi_reduction <add>, %54, %cst_27 [0] : vector<4x23xf32> to vector<23xf32>
    %56 = vector.shape_cast %55 : vector<23xf32> to vector<1x23xf32>
    %57 = arith.mulf %22, %51 : vector<1x23xf32>
    %58 = arith.subf %56, %57 : vector<1x23xf32>
    %59 = vector.broadcast %51 : vector<1x23xf32> to vector<512x23xf32>
    %60 = arith.mulf %0, %59 : vector<512x23xf32>
    %61 = vector.broadcast %58 : vector<1x23xf32> to vector<512x23xf32>
    %62 = arith.addf %60, %61 : vector<512x23xf32>
    %c0_28 = arith.constant 0 : index
    %c0_29 = arith.constant 0 : index
    %63 = vector.load %arg7[%c0_28, %c0_29] : memref<512x23xf32, #tpu.memory_space<vmem>>, vector<512x23xf32>
    tpu.vector_store %arg7[%c0_28, %c0_29], %62 {strides = array<i32>} : memref<512x23xf32, #tpu.memory_space<vmem>>, vector<512x23xf32>,
    %c0_30 = arith.constant 0 : index
    %c0_31 = arith.constant 0 : index
    %64 = vector.load %arg8[%c0_30, %c0_31] : memref<4x1xf32, #tpu.memory_space<vmem>>, vector<4x1xf32>
    tpu.vector_store %arg8[%c0_30, %c0_31], %18 {strides = array<i32>} : memref<4x1xf32, #tpu.memory_space<vmem>>, vector<4x1xf32>,
    %c0_32 = arith.constant 0 : index
    %c0_33 = arith.constant 0 : index
    %65 = vector.load %arg9[%c0_32, %c0_33] : memref<9x1xf32, #tpu.memory_space<vmem>>, vector<9x1xf32>
    tpu.vector_store %arg9[%c0_32, %c0_33], %43 {strides = array<i32>} : memref<9x1xf32, #tpu.memory_space<vmem>>, vector<9x1xf32>,
    return
  }
}

</mosaic_0001>

<bundles_post_ra>
// kernel: batchnorm_pallas.1
= control target key start
LH: loop header
LB: loop body
LE: loop exit
PB: predicated region body
PF: predicated region fallthrough
CT: control target
= control target key end

     0   :  { %15 = vsyncpa [#allocation3], 0  ;;  %s1740_s0 = inlined_call_operand.hbm [shape: f32[512,23], index: 0, kind: input, shape index: {}]   ;;  %s1741_s1 = inlined_call_operand.vmem [shape: f32[4,1], index: 1, kind: input, shape index: {}]   ;;  %s1742_s2 = inlined_call_operand.vmem [shape: f32[9,1], index: 2, kind: input, shape index: {}]   ;;  %s1743_s3 = inlined_call_operand.vmem [shape: f32[4,1], index: 3, kind: input, shape index: {}]   ;;  %s1744_s4 = inlined_call_operand.vmem [shape: f32[4,23], index: 4, kind: input, shape index: {}]   ;;  %s1745_s5 = inlined_call_operand.hbm [shape: f32[9,23], index: 5, kind: input, shape index: {}]   ;;  %s1746_s6 = inlined_call_operand.vmem [shape: f32[9,23], index: 6, kind: input, shape index: {}]   ;;  %s1747_s7 = inlined_call_operand.hbm [shape: f32[512,23], index: 7, kind: output, shape index: {0}]   ;;  %s1748_s8 = inlined_call_operand.vmem [shape: f32[4,1], index: 8, kind: output, shape index: {1}]   ;;  %s1749_s9 = inlined_call_operand.vmem [shape: f32[9,1], index: 9, kind: output, shape index: {2}]  }
   0x1   :  { %16 = vsyncpa [#allocation6], 0 }
   0x2   :  { %17 = vsyncpa [#allocation4], 0  ;;  %s22_s11 = sshll.u32 %s1740_s0, 4  ;;  %s959_s12 = smov [#allocation2]   ;;  %s23_s11 = int_to_ptr.hbm [resolvable:$true] %s22_s11 }
   0x3   :  { %s24_s13 = sshll.u32 %s959_s12, 4  ;;  %s43_s16 = sshll.u32 %s1745_s5, 4  ;;  %s25_s13 = int_to_ptr.vmem [resolvable:$true] %s24_s13  ;;  %s44_s16 = int_to_ptr.hbm [resolvable:$true] %s43_s16 }
   0x4   :  { %s960_s17 = smov 128   ;;  %s961_s18 = smov 8  }
   0x5   :  { %30 = dma.hbm_to_vmem [thread:$0]  %s23_s11, 8192, %s25_s13, [#allocation3], %s960_s17, %s960_s17, %s961_s18  }
   0x6   :  { %s962_s19 = smov [#allocation5]  }
   0x7   :  { %s45_s20 = sshll.u32 %s962_s19, 4  ;;  %s46_s20 = int_to_ptr.vmem [resolvable:$true] %s45_s20 }
   0x8   :  { %51 = dma.hbm_to_vmem [thread:$0]  %s44_s16, 256, %s46_s20, [#allocation6], %s960_s17, %s960_s17, %s961_s18  }
   0x9   :  { %953 = dma.done.wait [#allocation3], 8192  }
   0xa   :  { %954 = vsyncadd [#allocation3], 4294959104 }
   0xb   :  { %955 = dma.done.wait [#allocation6], 256  }
   0xc   :  { %956 = vsyncadd [#allocation6], 4294967040  ;;  %vm126_vm0 = vcmask 187392   ;;  %v1028_v0 = vld [vmem:[#allocation2] sm:$0xff]  ;;  %v1030_v1 = vld [vmem:[#allocation2 + $0x8] sm:$0xff]  ;;  %vm459_vm1 = vcmask 183296  }
   0xd   :  { %v1032_v2 = vld [vmem:[#allocation2 + $0x10] sm:$0xff]  ;;  %v1034_v3 = vld [vmem:[#allocation2 + $0x18] sm:$0xff]  ;;  %v127_v4 = vsel %vm126_vm0, %v1028_v0, 0.0  ;;  %v128_v5 = vsel %vm126_vm0, %v1030_v1, 0.0  ;;  %v1042_v7 = vld [vmem:[#allocation2 + $0x20] sm:$0xff]  ;;  %vm768_vm3 = vcmask 3072  }
   0xe   :  { %v130_v6 = vsel %vm126_vm0, %v1032_v2, 0.0  ;;  %v129_v8 = vadd.f32 %v128_v5, %v127_v4  ;;  %v132_v9 = vsel %vm126_vm0, %v1034_v3, 0.0  ;;  %v1046_v10 = vld [vmem:[#allocation2 + $0x28] sm:$0xff]  ;;  %v134_v12 = vsel %vm126_vm0, %v1042_v7, 0.0  ;;  %v1050_v13 = vld [vmem:[#allocation2 + $0x30] sm:$0xff]  ;;  %v1054_v16 = vld [vmem:[#allocation2 + $0x38] sm:$0xff] }
   0xf   :  { %v136_v15 = vsel %vm126_vm0, %v1046_v10, 0.0  ;;  %v138_v18 = vsel %vm126_vm0, %v1050_v13, 0.0  ;;  %v1058_v19 = vld [vmem:[#allocation2 + $0x40] sm:$0xff]  ;;  %v140_v21 = vsel %vm126_vm0, %v1054_v16, 0.0  ;;  %v1062_v22 = vld [vmem:[#allocation2 + $0x48] sm:$0xff]  ;;  %v1066_v25 = vld [vmem:[#allocation2 + $0x50] sm:$0xff] }
  0x10   :  { %v131_v11 = vadd.f32 %v130_v6, %v129_v8  ;;  %v142_v24 = vsel %vm126_vm0, %v1058_v19, 0.0  ;;  %v144_v27 = vsel %vm126_vm0, %v1062_v22, 0.0  ;;  %v1070_v28 = vld [vmem:[#allocation2 + $0x58] sm:$0xff]  ;;  %v146_v30 = vsel %vm126_vm0, %v1066_v25, 0.0  ;;  %v1074_v31 = vld [vmem:[#allocation2 + $0x60] sm:$0xff]  ;;  %v1078_v34 = vld [vmem:[#allocation2 + $0x68] sm:$0xff] }
  0x11   :  { %v148_v33 = vsel %vm126_vm0, %v1070_v28, 0.0  ;;  %v150_v36 = vsel %vm126_vm0, %v1074_v31, 0.0  ;;  %v1082_v37 = vld [vmem:[#allocation2 + $0x70] sm:$0xff]  ;;  %v152_v39 = vsel %vm126_vm0, %v1078_v34, 0.0  ;;  %v1086_v40 = vld [vmem:[#allocation2 + $0x78] sm:$0xff]  ;;  %v1090_v43 = vld [vmem:[#allocation2 + $0x80] sm:$0xff] }
  0x12   :  { %v133_v14 = vadd.f32 %v132_v9, %v131_v11  ;;  %v154_v42 = vsel %vm126_vm0, %v1082_v37, 0.0  ;;  %v156_v45 = vsel %vm126_vm0, %v1086_v40, 0.0  ;;  %v1094_v46 = vld [vmem:[#allocation2 + $0x88] sm:$0xff]  ;;  %v158_v48 = vsel %vm126_vm0, %v1090_v43, 0.0  ;;  %v1098_v49 = vld [vmem:[#allocation2 + $0x90] sm:$0xff]  ;;  %v1102_v52 = vld [vmem:[#allocation2 + $0x98] sm:$0xff] }
  0x13   :  { %v160_v51 = vsel %vm126_vm0, %v1094_v46, 0.0  ;;  %v162_v54 = vsel %vm126_vm0, %v1098_v49, 0.0  ;;  %v1106_v55 = vld [vmem:[#allocation2 + $0xa0] sm:$0xff]  ;;  %v164_v57 = vsel %vm126_vm0, %v1102_v52, 0.0  ;;  %v1110_v58 = vld [vmem:[#allocation2 + $0xa8] sm:$0xff]  ;;  %v1114_v61 = vld [vmem:[#allocation2 + $0xb0] sm:$0xff] }
  0x14   :  { %v135_v17 = vadd.f32 %v134_v12, %v133_v14  ;;  %v166_v60 = vsel %vm126_vm0, %v1106_v55, 0.0  ;;  %v168_v63 = vsel %vm126_vm0, %v1110_v58, 0.0  ;;  %v1118_v4 = vld [vmem:[#allocation2 + $0xb8] sm:$0xff]  ;;  %v170_v6 = vsel %vm126_vm0, %v1114_v61, 0.0  ;;  %v1122_v8 = vld [vmem:[#allocation2 + $0xc0] sm:$0xff]  ;;  %v1126_v12 = vld [vmem:[#allocation2 + $0xc8] sm:$0xff] }
  0x15   :  { %v172_v11 = vsel %vm126_vm0, %v1118_v4, 0.0  ;;  %vm501_vm4 = vcmask 180224   ;;  %vm770_vm5 = vcmask 7168   ;;  %vm772_vm6 = vcmask 0   ;;  %s780_s15 = sshll.u32 %s1747_s7, 4  ;;  %s781_s15 = int_to_ptr.hbm [resolvable:$true] %s780_s15 }
  0x16   :  { %v137_v20 = vadd.f32 %v136_v15, %v135_v17  ;;  %v174_v15 = vsel %vm126_vm0, %v1122_v8, 0.0  ;;  %v1130_v17 = vld [vmem:[#allocation2 + $0xd0] sm:$0xff] }
  0x18   :  { %v139_v23 = vadd.f32 %v138_v18, %v137_v20  ;;  %v176_v20 = vsel %vm126_vm0, %v1126_v12, 0.0 }
  0x1a   :  { %v141_v26 = vadd.f32 %v140_v21, %v139_v23  ;;  %v1134_v21 = vld [vmem:[#allocation2 + $0xd8] sm:$0xff] }
  0x1c   :  { %v143_v29 = vadd.f32 %v142_v24, %v141_v26  ;;  %v178_v24 = vsel %vm126_vm0, %v1130_v17, 0.0  ;;  %v1138_v26 = vld [vmem:[#allocation2 + $0xe0] sm:$0xff] }
  0x1e   :  { %v145_v32 = vadd.f32 %v144_v27, %v143_v29  ;;  %v180_v29 = vsel %vm126_vm0, %v1134_v21, 0.0 }
  0x20   :  { %v147_v35 = vadd.f32 %v146_v30, %v145_v32  ;;  %v1142_v30 = vld [vmem:[#allocation2 + $0xe8] sm:$0xff] }
  0x22   :  { %v149_v38 = vadd.f32 %v148_v33, %v147_v35  ;;  %v182_v33 = vsel %vm126_vm0, %v1138_v26, 0.0  ;;  %v1146_v35 = vld [vmem:[#allocation2 + $0xf0] sm:$0xff] }
  0x24   :  { %v151_v41 = vadd.f32 %v150_v36, %v149_v38  ;;  %v184_v38 = vsel %vm126_vm0, %v1142_v30, 0.0 }
  0x26   :  { %v153_v44 = vadd.f32 %v152_v39, %v151_v41  ;;  %v1150_v39 = vld [vmem:[#allocation2 + $0xf8] sm:$0xff] }
  0x28   :  { %v155_v47 = vadd.f32 %v154_v42, %v153_v44  ;;  %v186_v42 = vsel %vm126_vm0, %v1146_v35, 0.0  ;;  %v1154_v44 = vld [vmem:[#allocation2 + $0x100] sm:$0xff] }
  0x2a   :  { %v157_v50 = vadd.f32 %v156_v45, %v155_v47  ;;  %v188_v47 = vsel %vm126_vm0, %v1150_v39, 0.0 }
  0x2c   :  { %v159_v53 = vadd.f32 %v158_v48, %v157_v50  ;;  %v1158_v48 = vld [vmem:[#allocation2 + $0x108] sm:$0xff] }
  0x2e   :  { %v161_v56 = vadd.f32 %v160_v51, %v159_v53  ;;  %v190_v51 = vsel %vm126_vm0, %v1154_v44, 0.0  ;;  %v1162_v53 = vld [vmem:[#allocation2 + $0x110] sm:$0xff] }
  0x30   :  { %v163_v59 = vadd.f32 %v162_v54, %v161_v56  ;;  %v192_v56 = vsel %vm126_vm0, %v1158_v48, 0.0 }
  0x32   :  { %v165_v62 = vadd.f32 %v164_v57, %v163_v59  ;;  %v1166_v57 = vld [vmem:[#allocation2 + $0x118] sm:$0xff] }
  0x34   :  { %v167_v5 = vadd.f32 %v166_v60, %v165_v62  ;;  %v194_v60 = vsel %vm126_vm0, %v1162_v53, 0.0  ;;  %v1170_v62 = vld [vmem:[#allocation2 + $0x120] sm:$0xff] }
  0x36   :  { %v169_v9 = vadd.f32 %v168_v63, %v167_v5  ;;  %v196_v5 = vsel %vm126_vm0, %v1166_v57, 0.0 }
  0x38   :  { %v171_v14 = vadd.f32 %v170_v6, %v169_v9  ;;  %v1174_v6 = vld [vmem:[#allocation2 + $0x128] sm:$0xff] }
  0x3a   :  { %v173_v18 = vadd.f32 %v172_v11, %v171_v14  ;;  %v198_v11 = vsel %vm126_vm0, %v1170_v62, 0.0  ;;  %v1178_v14 = vld [vmem:[#allocation2 + $0x130] sm:$0xff] }
  0x3c   :  { %v175_v23 = vadd.f32 %v174_v15, %v173_v18  ;;  %v200_v18 = vsel %vm126_vm0, %v1174_v6, 0.0 }
  0x3e   :  { %v177_v27 = vadd.f32 %v176_v20, %v175_v23  ;;  %v1182_v20 = vld [vmem:[#allocation2 + $0x138] sm:$0xff] }
  0x40   :  { %v179_v32 = vadd.f32 %v178_v24, %v177_v27  ;;  %v202_v24 = vsel %vm126_vm0, %v1178_v14, 0.0  ;;  %v1186_v27 = vld [vmem:[#allocation2 + $0x140] sm:$0xff] }
  0x42   :  { %v181_v36 = vadd.f32 %v180_v29, %v179_v32  ;;  %v204_v32 = vsel %vm126_vm0, %v1182_v20, 0.0 }
  0x44   :  { %v183_v41 = vadd.f32 %v182_v33, %v181_v36  ;;  %v1190_v33 = vld [vmem:[#allocation2 + $0x148] sm:$0xff] }
  0x46   :  { %v185_v45 = vadd.f32 %v184_v38, %v183_v41  ;;  %v206_v38 = vsel %vm126_vm0, %v1186_v27, 0.0  ;;  %v1194_v41 = vld [vmem:[#allocation2 + $0x150] sm:$0xff] }
  0x48   :  { %v187_v50 = vadd.f32 %v186_v42, %v185_v45  ;;  %v208_v45 = vsel %vm126_vm0, %v1190_v33, 0.0 }
  0x4a   :  { %v189_v54 = vadd.f32 %v188_v47, %v187_v50  ;;  %v1198_v47 = vld [vmem:[#allocation2 + $0x158] sm:$0xff] }
  0x4c   :  { %v191_v59 = vadd.f32 %v190_v51, %v189_v54  ;;  %v210_v51 = vsel %vm126_vm0, %v1194_v41, 0.0  ;;  %v1202_v54 = vld [vmem:[#allocation2 + $0x160] sm:$0xff] }
  0x4e   :  { %v193_v63 = vadd.f32 %v192_v56, %v191_v59  ;;  %v212_v59 = vsel %vm126_vm0, %v1198_v47, 0.0 }
  0x50   :  { %v195_v9 = vadd.f32 %v194_v60, %v193_v63  ;;  %v1206_v60 = vld [vmem:[#allocation2 + $0x168] sm:$0xff] }
  0x52   :  { %v197_v15 = vadd.f32 %v196_v5, %v195_v9  ;;  %v214_v5 = vsel %vm126_vm0, %v1202_v54, 0.0  ;;  %v1210_v9 = vld [vmem:[#allocation2 + $0x170] sm:$0xff] }
  0x53   :  { %1765 = vst [vmem:[#allocation11_spill] sm:$0xff] %v1210_v9 }
  0x54   :  { %v199_v23 = vadd.f32 %v198_v11, %v197_v15  ;;  %v216_v15 = vsel %vm126_vm0, %v1206_v60, 0.0 }
  0x56   :  { %v201_v29 = vadd.f32 %v200_v18, %v199_v23  ;;  %v1214_v18 = vld [vmem:[#allocation2 + $0x178] sm:$0xff] }
  0x57   :  { %1766 = vst [vmem:[#allocation12_spill] sm:$0xff] %v1214_v18 }
  0x58   :  { %v203_v36 = vadd.f32 %v202_v24, %v201_v29  ;;  %v218_v24 = vsel %vm126_vm0, %v1210_v9, 0.0  ;;  %v1218_v29 = vld [vmem:[#allocation2 + $0x180] sm:$0xff] }
  0x59   :  { %1767 = vst [vmem:[#allocation13_spill] sm:$0xff] %v1218_v29 }
  0x5a   :  { %v205_v42 = vadd.f32 %v204_v32, %v203_v36  ;;  %v220_v36 = vsel %vm126_vm0, %v1214_v18, 0.0 }
  0x5c   :  { %v207_v50 = vadd.f32 %v206_v38, %v205_v42  ;;  %v1222_v38 = vld [vmem:[#allocation2 + $0x188] sm:$0xff] }
  0x5d   :  { %1768 = vst [vmem:[#allocation14_spill] sm:$0xff] %v1222_v38 }
  0x5e   :  { %v209_v56 = vadd.f32 %v208_v45, %v207_v50  ;;  %v222_v45 = vsel %vm126_vm0, %v1218_v29, 0.0  ;;  %v1226_v50 = vld [vmem:[#allocation2 + $0x190] sm:$0xff] }
  0x5f   :  { %1769 = vst [vmem:[#allocation15_spill] sm:$0xff] %v1226_v50 }
  0x60   :  { %v211_v63 = vadd.f32 %v210_v51, %v209_v56  ;;  %v224_v56 = vsel %vm126_vm0, %v1222_v38, 0.0 }
  0x62   :  { %v213_v11 = vadd.f32 %v212_v59, %v211_v63  ;;  %v1230_v59 = vld [vmem:[#allocation2 + $0x198] sm:$0xff] }
  0x63   :  { %1770 = vst [vmem:[#allocation16_spill] sm:$0xff] %v1230_v59 }
  0x64   :  { %v215_v23 = vadd.f32 %v214_v5, %v213_v11  ;;  %v226_v5 = vsel %vm126_vm0, %v1226_v50, 0.0  ;;  %v1234_v11 = vld [vmem:[#allocation2 + $0x1a0] sm:$0xff] }
  0x65   :  { %1771 = vst [vmem:[#allocation17_spill] sm:$0xff] %v1234_v11 }
  0x66   :  { %v217_v32 = vadd.f32 %v216_v15, %v215_v23  ;;  %v228_v23 = vsel %vm126_vm0, %v1230_v59, 0.0 }
  0x68   :  { %v219_v42 = vadd.f32 %v218_v24, %v217_v32  ;;  %v1238_v24 = vld [vmem:[#allocation2 + $0x1a8] sm:$0xff] }
  0x69   :  { %1772 = vst [vmem:[#allocation18_spill] sm:$0xff] %v1238_v24 }
  0x6a   :  { %v221_v51 = vadd.f32 %v220_v36, %v219_v42  ;;  %v230_v36 = vsel %vm126_vm0, %v1234_v11, 0.0  ;;  %v1242_v42 = vld [vmem:[#allocation2 + $0x1b0] sm:$0xff] }
  0x6b   :  { %1773 = vst [vmem:[#allocation19_spill] sm:$0xff] %v1242_v42 }
  0x6c   :  { %v223_v63 = vadd.f32 %v222_v45, %v221_v51  ;;  %v232_v45 = vsel %vm126_vm0, %v1238_v24, 0.0  ;;  %v1246_v51 = vld [vmem:[#allocation2 + $0x1b8] sm:$0xff] }
  0x6d   :  { %1774 = vst [vmem:[#allocation20_spill] sm:$0xff] %v1246_v51 }
  0x6e   :  { %v225_v15 = vadd.f32 %v224_v56, %v223_v63  ;;  %v234_v56 = vsel %vm126_vm0, %v1242_v42, 0.0  ;;  %v1250_v63 = vld [vmem:[#allocation2 + $0x1c0] sm:$0xff] }
  0x6f   :  { %1775 = vst [vmem:[#allocation21_spill] sm:$0xff] %v1250_v63 }
  0x70   :  { %v227_v32 = vadd.f32 %v226_v5, %v225_v15  ;;  %v236_v5 = vsel %vm126_vm0, %v1246_v51, 0.0  ;;  %v1254_v15 = vld [vmem:[#allocation2 + $0x1c8] sm:$0xff] }
  0x71   :  { %1776 = vst [vmem:[#allocation22_spill] sm:$0xff] %v1254_v15 }
  0x72   :  { %v229_v38 = vadd.f32 %v228_v23, %v227_v32  ;;  %v238_v23 = vsel %vm126_vm0, %v1250_v63, 0.0  ;;  %v1258_v32 = vld [vmem:[#allocation2 + $0x1d0] sm:$0xff] }
  0x73   :  { %1777 = vst [vmem:[#allocation23_spill] sm:$0xff] %v1258_v32 }
  0x74   :  { %v231_v50 = vadd.f32 %v230_v36, %v229_v38  ;;  %v240_v38 = vsel %vm126_vm0, %v1254_v15, 0.0  ;;  %v1262_v36 = vld [vmem:[#allocation2 + $0x1d8] sm:$0xff] }
  0x75   :  { %1778 = vst [vmem:[#allocation24_spill] sm:$0xff] %v1262_v36 }
  0x76   :  { %v233_v59 = vadd.f32 %v232_v45, %v231_v50  ;;  %v242_v50 = vsel %vm126_vm0, %v1258_v32, 0.0  ;;  %v1266_v45 = vld [vmem:[#allocation2 + $0x1e0] sm:$0xff] }
  0x77   :  { %1779 = vst [vmem:[#allocation25_spill] sm:$0xff] %v1266_v45 }
  0x78   :  { %v235_v11 = vadd.f32 %v234_v56, %v233_v59  ;;  %v244_v59 = vsel %vm126_vm0, %v1262_v36, 0.0  ;;  %v1270_v56 = vld [vmem:[#allocation2 + $0x1e8] sm:$0xff] }
  0x7a   :  { %v237_v24 = vadd.f32 %v236_v5, %v235_v11  ;;  %v246_v11 = vsel %vm126_vm0, %v1266_v45, 0.0  ;;  %v1274_v5 = vld [vmem:[#allocation2 + $0x1f0] sm:$0xff] }
  0x7c   :  { %v239_v42 = vadd.f32 %v238_v23, %v237_v24  ;;  %v248_v24 = vsel %vm126_vm0, %v1270_v56, 0.0  ;;  %v1278_v23 = vld [vmem:[#allocation2 + $0x1f8] sm:$0xff] }
  0x7d   :  { %v252_v36 = vsel %vm126_vm0, %v1278_v23, 0.0 }
  0x7e   :  { %v241_v51 = vadd.f32 %v240_v38, %v239_v42  ;;  %v250_v42 = vsel %vm126_vm0, %v1274_v5, 0.0 }
  0x80   :  { %v243_v63 = vadd.f32 %v242_v50, %v241_v51 }
  0x82   :  { %v245_v15 = vadd.f32 %v244_v59, %v243_v63  ;;  %v1287_v59 = vld [vmem:[%s1744_s4] sm:$0xf] }
  0x84   :  { %v247_v32 = vadd.f32 %v246_v11, %v245_v15 }
  0x86   :  { %v249_v38 = vadd.f32 %v248_v24, %v247_v32 }
  0x88   :  { %v251_v51 = vadd.f32 %v250_v42, %v249_v38  ;;  %v264_v38 = vmul.f32 %v1042_v7, %v1042_v7 }
  0x8a   :  { %v253_v50 = vadd.f32 %v252_v36, %v251_v51  ;;  %v262_v36 = vmul.f32 %v1032_v2, %v1032_v2  ;;  %v964_v2 = vmov 0   ;;  %v331_v7 = vsel %vm126_vm0, %v264_v38, 0.0 }
  0x8b   :  { %809 = vset.pattern.permute.xlu0 %v964_v2  ;;  %811 = vset.pattern.permute.xlu1 %v964_v2 }
  0x8c   :  { %v254_v29 = vrot.slane %v253_v50, 4  ;;  %v327_v51 = vsel %vm126_vm0, %v262_v36, 0.0  ;;  %810 = vset.pattern.permute.xlu2 %v964_v2 }
  0x8e   :  { %v255_v45 = vadd.f32 %v254_v29, %v253_v50  ;;  %v260_v29 = vmul.f32 %v1028_v0, %v1028_v0  ;;  %v963_v0 = vmov 512.0  }
  0x8f   :  { %812 = vrcp.f32 %v963_v0 }
  0x90   :  { %v256_v18 = vrot.slane %v255_v45, 2 }
  0x92   :  { %v257_v9 = vadd.f32 %v256_v18, %v255_v45  ;;  %v261_v18 = vmul.f32 %v1030_v1, %v1030_v1  ;;  %v324_v45 = vsel %vm126_vm0, %v260_v29, 0.0  ;;  %v265_v1 = vmul.f32 %v1046_v10, %v1046_v10 }
  0x93   :  { %v267_v29 = vmul.f32 %v1054_v16, %v1054_v16  ;;  %v270_v16 = vmul.f32 %v1066_v25, %v1066_v25 }
  0x94   :  { %v258_v63 = vrot.slane %v257_v9, 1  ;;  %v325_v24 = vsel %vm126_vm0, %v261_v18, 0.0  ;;  %v333_v18 = vsel %vm126_vm0, %v265_v1, 0.0  ;;  %v271_v1 = vmul.f32 %v1070_v28, %v1070_v28 }
  0x95   :  { %v326_v42 = vadd.f32 %v325_v24, %v324_v45  ;;  %v813_v36 = vpop.eup %812  ;;  %v268_v45 = vmul.f32 %v1058_v19, %v1058_v19  ;;  %v337_v38 = vsel %vm126_vm0, %v267_v29, 0.0  ;;  %v274_v28 = vmul.f32 %v1082_v37, %v1082_v37 }
  0x96   :  { %v1289_v15 = vadd.f32 %v258_v63, %v257_v9  ;;  %v263_v9 = vmul.f32 %v1034_v3, %v1034_v3  ;;  %vm468_vm2 = vweird.f32 %v813_v36  ;;  %v277_v37 = vmul.f32 %v1094_v46, %v1094_v46 }
  0x97   :  { %v328_v50 = vadd.f32 %v327_v51, %v326_v42  ;;  %v269_v42 = vmul.f32 %v1062_v22, %v1062_v22  ;;  %v339_v0 = vsel %vm126_vm0, %v268_v45, 0.0  ;;  %v272_v22 = vmul.f32 %v1074_v31, %v1074_v31 }
  0x98   :  { %v458_v32 = vmul.f32 %v1287_v59, %v1289_v15  ;;  %v329_v3 = vsel %vm126_vm0, %v263_v9, 0.0  ;;  %v275_v45 = vmul.f32 %v1086_v40, %v1086_v40  ;;  %v471_v40 = vld [vmem:[%s1741_s1] sm:$0xf]  ;;  %v279_v46 = vmul.f32 %v1102_v52, %v1102_v52 }
  0x99   :  { %v330_v63 = vadd.f32 %v329_v3, %v328_v50  ;;  %v341_v2 = vsel %vm126_vm0, %v269_v42, 0.0  ;;  %v351_v42 = vsel %vm126_vm0, %v274_v28, 0.0 }
  0x9a   :  { %v460_v11 = vsel %vm459_vm1, %v458_v32, 0.0  ;;  %v266_v32 = vmul.f32 %v1050_v13, %v1050_v13  ;;  %v464_v13 = vmul.f32 512.0, %v813_v36 }
  0x9b   :  { %461 = vadd.xlane.f32.xlu0 %v460_v11  ;;  %v332_v11 = vadd.f32 %v331_v7, %v330_v63  ;;  %v343_v63 = vsel %vm126_vm0, %v270_v16, 0.0  ;;  %v273_v7 = vmul.f32 %v1078_v34, %v1078_v34  ;;  %v276_v34 = vmul.f32 %v1090_v43, %v1090_v43 }
  0x9c   :  { %v335_v9 = vsel %vm126_vm0, %v266_v32, 0.0  ;;  %v465_v19 = vsub.f32 1.0, %v464_v13 }
  0x9d   :  { %v334_v10 = vadd.f32 %v333_v18, %v332_v11  ;;  %v345_v11 = vsel %vm126_vm0, %v271_v1, 0.0  ;;  %v347_v18 = vsel %vm126_vm0, %v272_v22, 0.0  ;;  %v355_v43 = vsel %vm126_vm0, %v276_v34, 0.0 }
  0x9e   :  { %v466_v25 = vmul.f32 %v813_v36, %v465_v19  ;;  %v472_v1 = vmul.f32 0.9, %v471_v40 }
  0x9f   :  { %v336_v24 = vadd.f32 %v335_v9, %v334_v10  ;;  %v349_v9 = vsel %vm126_vm0, %v273_v7, 0.0 }
  0xa0   :  { %v467_v31 = vadd.f32 %v813_v36, %v466_v25  ;;  %v281_v25 = vmul.f32 %v1110_v58, %v1110_v58 }
  0xa1   :  { %v338_v51 = vadd.f32 %v337_v38, %v336_v24 }
  0xa2   :  { %v1345_v38 = vsel %vm468_vm2, %v813_v36, %v467_v31  ;;  %v357_v36 = vsel %vm126_vm0, %v277_v37, 0.0  ;;  %v287_v37 = vmul.f32 %v1134_v21, %v1134_v21 }
  0xa3   :  { %v340_v50 = vadd.f32 %v339_v0, %v338_v51  ;;  %v353_v51 = vsel %vm126_vm0, %v275_v45, 0.0  ;;  %v278_v0 = vmul.f32 %v1098_v49, %v1098_v49  ;;  %v284_v45 = vmul.f32 %v1122_v8, %v1122_v8 }
  0xa5   :  { %v342_v3 = vadd.f32 %v341_v2, %v340_v50  ;;  %v359_v49 = vsel %vm126_vm0, %v278_v0, 0.0  ;;  %v289_v0 = vmul.f32 %v1142_v30, %v1142_v30 }
  0xa7   :  { %v344_v32 = vadd.f32 %v343_v63, %v342_v3  ;;  %v280_v63 = vmul.f32 %v1106_v55, %v1106_v55 }
  0xa9   :  { %v346_v29 = vadd.f32 %v345_v11, %v344_v32  ;;  %v361_v11 = vsel %vm126_vm0, %v279_v46, 0.0  ;;  %v363_v55 = vsel %vm126_vm0, %v280_v63, 0.0  ;;  %v292_v46 = vmul.f32 %v1154_v44, %v1154_v44 }
  0xaa   :  { %v294_v63 = vmul.f32 %v1162_v53, %v1162_v53 }
  0xab   :  { %v348_v10 = vadd.f32 %v347_v18, %v346_v29  ;;  %v282_v29 = vmul.f32 %v1114_v61, %v1114_v61  ;;  %v283_v18 = vmul.f32 %v1118_v4, %v1118_v4  ;;  %v371_v4 = vsel %vm126_vm0, %v284_v45, 0.0 }
  0xad   :  { %v350_v24 = vadd.f32 %v349_v9, %v348_v10  ;;  %v365_v10 = vsel %vm126_vm0, %v281_v25, 0.0  ;;  %v367_v31 = vsel %vm126_vm0, %v282_v29, 0.0  ;;  %v369_v61 = vsel %vm126_vm0, %v283_v18, 0.0 }
  0xae   :  { %v296_v25 = vmul.f32 %v1170_v62, %v1170_v62  ;;  %v299_v18 = vmul.f32 %v1182_v20, %v1182_v20 }
  0xaf   :  { %v352_v13 = vadd.f32 %v351_v42, %v350_v24  ;;  %v285_v24 = vmul.f32 %v1126_v12, %v1126_v12  ;;  %v286_v42 = vmul.f32 %v1130_v17, %v1130_v17  ;;  %v377_v17 = vsel %vm126_vm0, %v287_v37, 0.0 }
  0xb0   :  { %v305_v37 = vmul.f32 %v1206_v60, %v1206_v60 }
  0xb1   :  { %v354_v16 = vadd.f32 %v353_v51, %v352_v13  ;;  %v373_v8 = vsel %vm126_vm0, %v285_v24, 0.0  ;;  %v288_v51 = vmul.f32 %v1138_v26, %v1138_v26  ;;  %v375_v12 = vsel %vm126_vm0, %v286_v42, 0.0 }
  0xb2   :  { %v381_v26 = vsel %vm126_vm0, %v289_v0, 0.0  ;;  %v302_v24 = vmul.f32 %v1194_v41, %v1194_v41 }
  0xb3   :  { %v356_v2 = vadd.f32 %v355_v43, %v354_v16  ;;  %v290_v43 = vmul.f32 %v1146_v35, %v1146_v35  ;;  %v379_v21 = vsel %vm126_vm0, %v288_v51, 0.0 }
  0xb5   :  { %v358_v22 = vadd.f32 %v357_v36, %v356_v2  ;;  %v383_v30 = vsel %vm126_vm0, %v290_v43, 0.0 }
  0xb7   :  { %v360_v7 = vadd.f32 %v359_v49, %v358_v22 }
  0xb9   :  { %v362_v52 = vadd.f32 %v361_v11, %v360_v7 }
  0xbb   :  { %v364_v28 = vadd.f32 %v363_v55, %v362_v52  ;;  %v297_v52 = vmul.f32 %v1174_v6, %v1174_v6  ;;  %v298_v55 = vmul.f32 %v1178_v14, %v1178_v14  ;;  %v401_v14 = vsel %vm126_vm0, %v299_v18, 0.0 }
  0xbd   :  { %v366_v58 = vadd.f32 %v365_v10, %v364_v28  ;;  %v397_v62 = vsel %vm126_vm0, %v297_v52, 0.0  ;;  %v399_v6 = vsel %vm126_vm0, %v298_v55, 0.0 }
  0xbf   :  { %v368_v9 = vadd.f32 %v367_v31, %v366_v58  ;;  %v300_v58 = vmul.f32 %v1186_v27, %v1186_v27  ;;  %v301_v31 = vmul.f32 %v1190_v33, %v1190_v33  ;;  %v407_v33 = vsel %vm126_vm0, %v302_v24, 0.0  ;;  %v1791_v24 = vld [vmem:[#allocation22_spill] sm:$0xff] }
  0xc1   :  { %v370_v34 = vadd.f32 %v369_v61, %v368_v9  ;;  %v403_v20 = vsel %vm126_vm0, %v300_v58, 0.0  ;;  %v405_v27 = vsel %vm126_vm0, %v301_v31, 0.0 }
  0xc3   :  { %v372_v13 = vadd.f32 %v371_v4, %v370_v34  ;;  %v303_v34 = vmul.f32 %v1198_v47, %v1198_v47  ;;  %v304_v4 = vmul.f32 %v1202_v54, %v1202_v54  ;;  %v413_v54 = vsel %vm126_vm0, %v305_v37, 0.0 }
  0xc5   :  { %v374_v40 = vadd.f32 %v373_v8, %v372_v13  ;;  %v409_v41 = vsel %vm126_vm0, %v303_v34, 0.0  ;;  %v411_v47 = vsel %vm126_vm0, %v304_v4, 0.0 }
  0xc7   :  { %v376_v16 = vadd.f32 %v375_v12, %v374_v40  ;;  %v1780_v40 = vld [vmem:[#allocation11_spill] sm:$0xff] }
  0xc8   :  { %v306_v51 = vmul.f32 %v1780_v40, %v1780_v40  ;;  %v1794_v40 = vld [vmem:[#allocation25_spill] sm:$0xff] }
  0xca   :  { %v415_v60 = vsel %vm126_vm0, %v306_v51, 0.0  ;;  %v320_v51 = vmul.f32 %v1794_v40, %v1794_v40 }
 0x10e   :  { %v462_v50 = vpop.xlane.xlu0 %461 }
 0x10f   :  { %v470_v19 = vmul.f32 %v1345_v38, %v462_v50  ;;  %v378_v50 = vadd.f32 %v377_v17, %v376_v16  ;;  %v1781_v16 = vld [vmem:[#allocation12_spill] sm:$0xff] }
 0x110   :  { %v307_v0 = vmul.f32 %v1781_v16, %v1781_v16  ;;  %v321_v16 = vmul.f32 %v1270_v56, %v1270_v56 }
 0x111   :  { %v473_v3 = vmul.f32 0.1, %v470_v19  ;;  %v291_v19 = vmul.f32 %v1150_v39, %v1150_v39  ;;  %v387_v39 = vsel %vm126_vm0, %v292_v46, 0.0  ;;  %v1784_v46 = vld [vmem:[#allocation15_spill] sm:$0xff] }
 0x113   :  { %v474_v32 = vadd.f32 %v473_v3, %v472_v1  ;;  %v380_v1 = vadd.f32 %v379_v21, %v378_v50  ;;  %v293_v3 = vmul.f32 %v1158_v48, %v1158_v48  ;;  %v385_v35 = vsel %vm126_vm0, %v291_v19, 0.0  ;;  %v1782_v50 = vld [vmem:[#allocation13_spill] sm:$0xff] }
 0x114   :  { %v391_v48 = vsel %vm126_vm0, %v294_v63, 0.0  ;;  %v308_v43 = vmul.f32 %v1782_v50, %v1782_v50  ;;  %v445_v50 = vsel %vm126_vm0, %v321_v16, 0.0 }
 0x115   :  { %769 = vst.msk [vmem:[%s1748_s8] sm:$0xf] %vm768_vm3, %v474_v32  ;;  %477 = vperm.xlu0 %809, %v474_v32   ;;  %v382_v2 = vadd.f32 %v381_v26, %v380_v1  ;;  %v295_v32 = vmul.f32 %v1166_v57, %v1166_v57  ;;  %v389_v44 = vsel %vm126_vm0, %v293_v3, 0.0  ;;  %v395_v57 = vsel %vm126_vm0, %v296_v25, 0.0  ;;  %v1783_v1 = vld [vmem:[#allocation14_spill] sm:$0xff] }
 0x116   :  { %v309_v19 = vmul.f32 %v1783_v1, %v1783_v1  ;;  %v417_v26 = vsel %vm126_vm0, %v307_v0, 0.0  ;;  %v1787_v25 = vld [vmem:[#allocation18_spill] sm:$0xff]  ;;  %v443_v0 = vsel %vm126_vm0, %v320_v51, 0.0 }
 0x117   :  { %v384_v36 = vadd.f32 %v383_v30, %v382_v2  ;;  %v393_v53 = vsel %vm126_vm0, %v295_v32, 0.0  ;;  %v310_v30 = vmul.f32 %v1784_v46, %v1784_v46 }
 0x118   :  { %v421_v63 = vsel %vm126_vm0, %v309_v19, 0.0 }
 0x119   :  { %v386_v22 = vadd.f32 %v385_v35, %v384_v36  ;;  %v419_v36 = vsel %vm126_vm0, %v308_v43, 0.0  ;;  %v1785_v35 = vld [vmem:[#allocation16_spill] sm:$0xff] }
 0x11b   :  { %v388_v49 = vadd.f32 %v387_v39, %v386_v22  ;;  %v311_v22 = vmul.f32 %v1785_v35, %v1785_v35 }
 0x11d   :  { %v390_v7 = vadd.f32 %v389_v44, %v388_v49  ;;  %v1786_v49 = vld [vmem:[#allocation17_spill] sm:$0xff]  ;;  %v423_v44 = vsel %vm126_vm0, %v310_v30, 0.0 }
 0x11e   :  { %v312_v32 = vmul.f32 %v1786_v49, %v1786_v49 }
 0x11f   :  { %v392_v11 = vadd.f32 %v391_v48, %v390_v7  ;;  %v313_v48 = vmul.f32 %v1787_v25, %v1787_v25 }
 0x120   :  { %v427_v55 = vsel %vm126_vm0, %v312_v32, 0.0 }
 0x121   :  { %v394_v29 = vadd.f32 %v393_v53, %v392_v11  ;;  %v425_v11 = vsel %vm126_vm0, %v311_v22, 0.0  ;;  %v1788_v53 = vld [vmem:[#allocation19_spill] sm:$0xff] }
 0x123   :  { %v396_v28 = vadd.f32 %v395_v57, %v394_v29  ;;  %v314_v29 = vmul.f32 %v1788_v53, %v1788_v53 }
 0x125   :  { %v398_v10 = vadd.f32 %v397_v62, %v396_v28  ;;  %v1789_v28 = vld [vmem:[#allocation20_spill] sm:$0xff]  ;;  %v429_v62 = vsel %vm126_vm0, %v313_v48, 0.0  ;;  %v431_v58 = vsel %vm126_vm0, %v314_v29, 0.0  ;;  %v494_v29 = vld [vmem:[#allocation5] sm:$0xff] }
 0x126   :  { %v315_v18 = vmul.f32 %v1789_v28, %v1789_v28 }
 0x127   :  { %v400_v45 = vadd.f32 %v399_v6, %v398_v10 }
 0x129   :  { %v402_v9 = vadd.f32 %v401_v14, %v400_v45  ;;  %v1790_v45 = vld [vmem:[#allocation21_spill] sm:$0xff]  ;;  %v433_v14 = vsel %vm126_vm0, %v315_v18, 0.0  ;;  %v495_v18 = vld [vmem:[#allocation5 + $0x8] sm:$0x1] }
 0x12a   :  { %v316_v31 = vmul.f32 %v1790_v45, %v1790_v45 }
 0x12b   :  { %v404_v61 = vadd.f32 %v403_v20, %v402_v9  ;;  %v317_v20 = vmul.f32 %v1791_v24, %v1791_v24  ;;  %v508_v24 = vld [vmem:[%s1742_s2 + $0x8] sm:$0x1] }
 0x12d   :  { %v406_v42 = vadd.f32 %v405_v27, %v404_v61  ;;  %v435_v61 = vsel %vm126_vm0, %v316_v31, 0.0  ;;  %v1792_v27 = vld [vmem:[#allocation23_spill] sm:$0xff]  ;;  %v437_v4 = vsel %vm126_vm0, %v317_v20, 0.0 }
 0x12f   :  { %v408_v13 = vadd.f32 %v407_v33, %v406_v42  ;;  %v318_v42 = vmul.f32 %v1792_v27, %v1792_v27 }
 0x131   :  { %v410_v8 = vadd.f32 %v409_v41, %v408_v13  ;;  %v1793_v13 = vld [vmem:[#allocation24_spill] sm:$0xff]  ;;  %v439_v41 = vsel %vm126_vm0, %v318_v42, 0.0 }
 0x132   :  { %v319_v37 = vmul.f32 %v1793_v13, %v1793_v13 }
 0x133   :  { %v412_v12 = vadd.f32 %v411_v47, %v410_v8 }
 0x134   :  { %v441_v47 = vsel %vm126_vm0, %v319_v37, 0.0 }
 0x135   :  { %v414_v17 = vadd.f32 %v413_v54, %v412_v12 }
 0x137   :  { %v416_v21 = vadd.f32 %v415_v60, %v414_v17  ;;  %v322_v17 = vmul.f32 %v1274_v5, %v1274_v5  ;;  %v323_v60 = vmul.f32 %v1278_v23, %v1278_v23 }
 0x139   :  { %v418_v2 = vadd.f32 %v417_v26, %v416_v21  ;;  %v447_v21 = vsel %vm126_vm0, %v322_v17, 0.0  ;;  %v449_v19 = vsel %vm126_vm0, %v323_v60, 0.0  ;;  %v537_v60 = vld [vmem:[%s1746_s6] sm:$0xff] }
 0x13b   :  { %v420_v3 = vadd.f32 %v419_v36, %v418_v2 }
 0x13d   :  { %v422_v39 = vadd.f32 %v421_v63, %v420_v3 }
 0x13f   :  { %v424_v7 = vadd.f32 %v423_v44, %v422_v39 }
 0x141   :  { %v426_v52 = vadd.f32 %v425_v11, %v424_v7 }
 0x143   :  { %v428_v57 = vadd.f32 %v427_v55, %v426_v52 }
 0x145   :  { %v430_v10 = vadd.f32 %v429_v62, %v428_v57 }
 0x147   :  { %v432_v6 = vadd.f32 %v431_v58, %v430_v10  ;;  %v560_v58 = vld [vmem:[%s1743_s3] sm:$0xf] }
 0x149   :  { %v434_v9 = vadd.f32 %v433_v14, %v432_v6 }
 0x14b   :  { %v436_v34 = vadd.f32 %v435_v61, %v434_v9 }
 0x14d   :  { %v438_v33 = vadd.f32 %v437_v4, %v436_v34  ;;  %v510_v34 = vmul.f32 0.9, %v508_v24 }
 0x14f   :  { %v440_v8 = vadd.f32 %v439_v41, %v438_v33 }
 0x151   :  { %v442_v12 = vadd.f32 %v441_v47, %v440_v8 }
 0x153   :  { %v444_v54 = vadd.f32 %v443_v0, %v442_v12 }
 0x155   :  { %v446_v43 = vadd.f32 %v445_v50, %v444_v54 }
 0x157   :  { %v448_v1 = vadd.f32 %v447_v21, %v446_v43  ;;  %v538_v21 = vld [vmem:[%s1746_s6 + $0x8] sm:$0x1]  ;;  %s965_s6 = smov [#allocation7]  }
 0x158   :  { %s778_s12 = sshll.u32 %s965_s6, 4  ;;  %s779_s12 = int_to_ptr.vmem [resolvable:$true] %s778_s12 }
 0x159   :  { %v450_v26 = vadd.f32 %v449_v19, %v448_v1 }
 0x15b   :  { %v451_v2 = vrot.slane %v450_v26, 4 }
 0x15d   :  { %v452_v46 = vadd.f32 %v451_v2, %v450_v26 }
 0x15f   :  { %v453_v3 = vrot.slane %v452_v46, 2 }
 0x161   :  { %v454_v63 = vadd.f32 %v453_v3, %v452_v46 }
 0x163   :  { %v455_v32 = vrot.slane %v454_v63, 1 }
 0x165   :  { %v456_v7 = vadd.f32 %v455_v32, %v454_v63 }
 0x187   :  { %v478_v56 = vpop.permute.xlu0 %477 }
 0x188   :  { %v480_v30 = vmul.f32 %v478_v56, %v1287_v59 }
 0x18a   :  { %v481_v36 = vsel %vm459_vm1, %v480_v30, 0.0 }
 0x18b   :  { %v482_v5 = vrot.slane %v481_v36, 4 }
 0x18d   :  { %v483_v35 = vadd.f32 %v482_v5, %v481_v36 }
 0x18f   :  { %v484_v22 = vrot.slane %v483_v35, 2 }
 0x191   :  { %v485_v39 = vadd.f32 %v484_v22, %v483_v35 }
 0x193   :  { %v486_v49 = vrot.slane %v485_v39, 1 }
 0x195   :  { %v1497_v44 = vadd.f32 %v486_v49, %v485_v39 }
 0x197   :  { %v488_v25 = vmul.f32 2.0, %v1497_v44  ;;  %v491_v48 = vmul.f32 512.0, %v1497_v44 }
 0x199   :  { %v489_v11 = vmul.f32 %v488_v25, %v1289_v15  ;;  %v492_v53 = vmul.f32 %v491_v48, %v1497_v44  ;;  %v507_v15 = vld [vmem:[%s1742_s2] sm:$0xff] }
 0x19a   :  { %v509_v45 = vmul.f32 0.9, %v507_v15  ;;  %v822_v15 = vld [vmem:[#allocation2 + $0x20] sm:$0xff] }
 0x19b   :  { %v490_v52 = vsub.f32 %v456_v7, %v489_v11 }
 0x19d   :  { %v493_v55 = vadd.f32 %v492_v53, %v490_v52 }
 0x19f   :  { %v496_v57 = vmul.f32 %v494_v29, %v493_v55  ;;  %v497_v62 = vmul.f32 %v495_v18, %v493_v55  ;;  %v818_v29 = vld [vmem:[#allocation2] sm:$0xff]  ;;  %v819_v55 = vld [vmem:[#allocation2 + $0x8] sm:$0xff] }
 0x1a1   :  { %v498_v28 = vsel %vm126_vm0, %v496_v57, 0.0  ;;  %v502_v10 = vsel %vm501_vm4, %v497_v62, 0.0 }
 0x1a2   :  { %499 = vadd.xlane.f32.xlu1 %v498_v28  ;;  %v820_v28 = vld [vmem:[#allocation2 + $0x10] sm:$0xff] }
 0x1aa   :  { %503 = vadd.xlane.f32.xlu1 %v502_v10  ;;  %v821_v10 = vld [vmem:[#allocation2 + $0x18] sm:$0xff] }
 0x1c3   :  { %563 = vperm.xlu1 %811, %v560_v58  }
 0x215   :  { %v500_v6 = vpop.xlane.xlu1 %499 }
 0x216   :  { %v505_v31 = vmul.f32 %v500_v6, %v1345_v38 }
 0x218   :  { %v511_v14 = vmul.f32 0.1, %v505_v31 }
 0x21a   :  { %v513_v9 = vadd.f32 %v511_v14, %v509_v45  ;;  %v823_v14 = vld [vmem:[#allocation2 + $0x28] sm:$0xff] }
 0x21c   :  { %v515_v20 = vadd.f32 1e-05, %v513_v9  ;;  %771 = vst.msk [vmem:[%s1749_s9] sm:$0xff] %vm770_vm5, %v513_v9 }
 0x21d   :  { %v504_v61 = vpop.xlane.xlu1 %503 }
 0x21e   :  { %814 = vrsqrt.f32 %v515_v20  ;;  %v506_v27 = vmul.f32 %v504_v61, %v1345_v38  ;;  %vm523_vm8 = vweird.f32 %v515_v20 }
 0x220   :  { %v512_v42 = vmul.f32 0.1, %v506_v27  ;;  %v825_v27 = vld [vmem:[#allocation2 + $0x38] sm:$0xff] }
 0x222   :  { %v514_v4 = vadd.f32 %v512_v42, %v510_v34 }
 0x224   :  { %v815_v33 = vpop.eup %814  ;;  %v516_v13 = vadd.f32 1e-05, %v514_v4  ;;  %773 = vst.msk [vmem:[%s1749_s9 + $0x8] sm:$0x1] %vm772_vm6, %v514_v4 }
 0x225   :  { %v518_v37 = vmul.f32 %v815_v33, %v515_v20  ;;  %vm524_vm7 = vweird.f32 %v815_v33  ;;  %v824_v20 = vld [vmem:[#allocation2 + $0x30] sm:$0xff] }
 0x226   :  { %816 = vrsqrt.f32 %v516_v13  ;;  %vm525_vm9 = vmor %vm523_vm8, %vm524_vm7  ;;  %vm533_vm11 = vweird.f32 %v516_v13 }
 0x227   :  { %v519_v41 = vmul.f32 %v815_v33, %v518_v37 }
 0x229   :  { %v520_v8 = vmul.f32 0.5, %v519_v41  ;;  %v827_v41 = vld [vmem:[#allocation2 + $0x48] sm:$0xff] }
 0x22b   :  { %v521_v40 = vsub.f32 1.5, %v520_v8 }
 0x22c   :  { %v817_v51 = vpop.eup %816 }
 0x22d   :  { %v528_v47 = vmul.f32 %v817_v51, %v516_v13  ;;  %v522_v12 = vmul.f32 %v815_v33, %v521_v40  ;;  %vm534_vm10 = vweird.f32 %v817_v51 }
 0x22e   :  { %vm535_vm12 = vmor %vm533_vm11, %vm534_vm10 }
 0x22f   :  { %v526_v38 = vsel %vm525_vm9, %v815_v33, %v522_v12  ;;  %v529_v16 = vmul.f32 %v817_v51, %v528_v47  ;;  %v826_v33 = vld [vmem:[#allocation2 + $0x40] sm:$0xff] }
 0x230   :  { %541 = vperm.xlu2 %810, %v526_v38   ;;  %v829_v38 = vld [vmem:[#allocation2 + $0x58] sm:$0xff] }
 0x231   :  { %v530_v0 = vmul.f32 0.5, %v529_v16 }
 0x233   :  { %v531_v54 = vsub.f32 1.5, %v530_v0 }
 0x235   :  { %v532_v17 = vmul.f32 %v817_v51, %v531_v54  ;;  %v564_v2 = vpop.permute.xlu1 %563  ;;  %v830_v54 = vld [vmem:[#allocation2 + $0x60] sm:$0xff] }
 0x236   :  { %v566_v36 = vmul.f32 %v564_v2, %v1287_v59  ;;  %v833_v2 = vld [vmem:[#allocation2 + $0x78] sm:$0xff] }
 0x237   :  { %v536_v50 = vsel %vm535_vm12, %v817_v51, %v532_v17  ;;  %v828_v51 = vld [vmem:[#allocation2 + $0x50] sm:$0xff] }
 0x238   :  { %546 = vperm.xlu2 %810, %v536_v50   ;;  %v567_v3 = vsel %vm459_vm1, %v566_v36, 0.0 }
 0x239   :  { %v568_v22 = vrot.slane %v567_v3, 4 }
 0x23b   :  { %v569_v39 = vadd.f32 %v568_v22, %v567_v3  ;;  %v835_v3 = vld [vmem:[#allocation2 + $0x88] sm:$0xff] }
 0x23d   :  { %v570_v32 = vrot.slane %v569_v39, 2 }
 0x23f   :  { %v571_v25 = vadd.f32 %v570_v32, %v569_v39  ;;  %v836_v39 = vld [vmem:[#allocation2 + $0x90] sm:$0xff] }
 0x241   :  { %v572_v11 = vrot.slane %v571_v25, 1 }
 0x243   :  { %v573_v53 = vadd.f32 %v572_v11, %v571_v25 }
 0x28a   :  { %v542_v43 = vpop.permute.xlu2 %541 }
 0x28b   :  { %v549_v1 = vmul.f32 %v542_v43, %v537_v60  ;;  %v831_v43 = vld [vmem:[#allocation2 + $0x68] sm:$0xff] }
 0x28d   :  { %v551_v56 = vsel %vm126_vm0, %v549_v1, 0.0  ;;  %v832_v1 = vld [vmem:[#allocation2 + $0x70] sm:$0xff] }
 0x292   :  { %v547_v19 = vpop.permute.xlu2 %546 }
 0x293   :  { %v550_v26 = vmul.f32 %v547_v19, %v538_v21 }
 0x295   :  { %v552_v46 = vsel %vm501_vm4, %v550_v26, 0.0 }
 0x296   :  { %v553_v30 = vadd.f32 %v552_v46, %v551_v56 }
 0x298   :  { %v554_v5 = vrot.slane %v553_v30, 4 }
 0x29a   :  { %v555_v35 = vadd.f32 %v554_v5, %v553_v30  ;;  %v834_v30 = vld [vmem:[#allocation2 + $0x80] sm:$0xff] }
 0x29c   :  { %v556_v63 = vrot.slane %v555_v35, 2 }
 0x29e   :  { %v557_v49 = vadd.f32 %v556_v63, %v555_v35 }
 0x2a0   :  { %v558_v7 = vrot.slane %v557_v49, 1 }
 0x2a2   :  { %v1532_v48 = vadd.f32 %v558_v7, %v557_v49  ;;  %v837_v7 = vld [vmem:[#allocation2 + $0x98] sm:$0xff] }
 0x2a4   :  { %v574_v52 = vmul.f32 %v1532_v48, %v1497_v44  ;;  %v576_v59 = vmul.f32 %v818_v29, %v1532_v48  ;;  %v577_v57 = vmul.f32 %v819_v55, %v1532_v48  ;;  %v578_v18 = vmul.f32 %v820_v28, %v1532_v48  ;;  %v840_v28 = vld [vmem:[#allocation2 + $0xb0] sm:$0xff] }
 0x2a5   :  { %v579_v58 = vmul.f32 %v821_v10, %v1532_v48  ;;  %v580_v6 = vmul.f32 %v822_v15, %v1532_v48  ;;  %v581_v9 = vmul.f32 %v823_v14, %v1532_v48  ;;  %v582_v61 = vmul.f32 %v824_v20, %v1532_v48  ;;  %v843_v14 = vld [vmem:[#allocation2 + $0xc8] sm:$0xff]  ;;  %v844_v20 = vld [vmem:[#allocation2 + $0xd0] sm:$0xff] }
 0x2a6   :  { %v1539_v62 = vsub.f32 %v573_v53, %v574_v52  ;;  %v583_v42 = vmul.f32 %v825_v27, %v1532_v48  ;;  %v584_v13 = vmul.f32 %v826_v33, %v1532_v48  ;;  %v585_v8 = vmul.f32 %v827_v41, %v1532_v48  ;;  %v845_v27 = vld [vmem:[#allocation2 + $0xd8] sm:$0xff]  ;;  %v846_v33 = vld [vmem:[#allocation2 + $0xe0] sm:$0xff]  ;;  %v847_v41 = vld [vmem:[#allocation2 + $0xe8] sm:$0xff] }
 0x2a7   :  { %v586_v47 = vmul.f32 %v828_v51, %v1532_v48  ;;  %v587_v16 = vmul.f32 %v829_v38, %v1532_v48  ;;  %v588_v17 = vmul.f32 %v830_v54, %v1532_v48  ;;  %v589_v60 = vmul.f32 %v831_v43, %v1532_v48  ;;  %v848_v51 = vld [vmem:[#allocation2 + $0xf0] sm:$0xff]  ;;  %v849_v38 = vld [vmem:[#allocation2 + $0xf8] sm:$0xff]  ;;  %v850_v54 = vld [vmem:[#allocation2 + $0x100] sm:$0xff] }
 0x2a8   :  { %v640_v44 = vadd.f32 %v576_v59, %v1539_v62  ;;  %v641_v45 = vadd.f32 %v577_v57, %v1539_v62  ;;  %v642_v31 = vadd.f32 %v578_v18, %v1539_v62  ;;  %v643_v24 = vadd.f32 %v579_v58, %v1539_v62  ;;  %v839_v59 = vld [vmem:[#allocation2 + $0xa8] sm:$0xff]  ;;  %v841_v58 = vld [vmem:[#allocation2 + $0xb8] sm:$0xff] }
 0x2a9   :  { %v644_v34 = vadd.f32 %v580_v6, %v1539_v62  ;;  %v645_v4 = vadd.f32 %v581_v9, %v1539_v62  ;;  %v646_v37 = vadd.f32 %v582_v61, %v1539_v62  ;;  %v647_v40 = vadd.f32 %v583_v42, %v1539_v62  ;;  %v851_v43 = vld [vmem:[#allocation2 + $0x108] sm:$0xff] }
 0x2aa   :  { %704 = vst.msk [vmem:[#allocation7] sm:$0xff] %vm126_vm0, %v640_v44  ;;  %v648_v12 = vadd.f32 %v584_v13, %v1539_v62  ;;  %v649_v0 = vadd.f32 %v585_v8, %v1539_v62  ;;  %v650_v50 = vadd.f32 %v586_v47, %v1539_v62  ;;  %v651_v21 = vadd.f32 %v587_v16, %v1539_v62  ;;  %v842_v44 = vld [vmem:[#allocation2 + $0xc0] sm:$0xff] }
 0x2ab   :  { %705 = vst.msk [vmem:[#allocation7 + $0x8] sm:$0xff] %vm126_vm0, %v641_v45  ;;  %v590_v19 = vmul.f32 %v832_v1, %v1532_v48  ;;  %v652_v26 = vadd.f32 %v588_v17, %v1539_v62  ;;  %v591_v56 = vmul.f32 %v833_v2, %v1532_v48  ;;  %v653_v46 = vadd.f32 %v589_v60, %v1539_v62  ;;  %v852_v1 = vld [vmem:[#allocation2 + $0x110] sm:$0xff]  ;;  %v853_v2 = vld [vmem:[#allocation2 + $0x118] sm:$0xff] }
 0x2ac   :  { %706 = vst.msk [vmem:[#allocation7 + $0x10] sm:$0xff] %vm126_vm0, %v642_v31  ;;  %v592_v36 = vmul.f32 %v834_v30, %v1532_v48  ;;  %v593_v35 = vmul.f32 %v835_v3, %v1532_v48  ;;  %v639_v22 = vmul.f32 %v1532_v48, %v1278_v23  ;;  %v594_v49 = vmul.f32 %v836_v39, %v1532_v48  ;;  %v838_v23 = vld [vmem:[#allocation2 + $0xa0] sm:$0xff]  ;;  %v855_v3 = vld [vmem:[#allocation2 + $0x128] sm:$0xff] }
 0x2ad   :  { %707 = vst.msk [vmem:[#allocation7 + $0x18] sm:$0xff] %vm126_vm0, %v643_v24  ;;  %v654_v5 = vadd.f32 %v590_v19, %v1539_v62  ;;  %v655_v63 = vadd.f32 %v591_v56, %v1539_v62  ;;  %v595_v25 = vmul.f32 %v837_v7, %v1532_v48  ;;  %v596_v53 = vmul.f32 %v838_v23, %v1532_v48  ;;  %v854_v30 = vld [vmem:[#allocation2 + $0x120] sm:$0xff] }
 0x2ae   :  { %708 = vst.msk [vmem:[#allocation7 + $0x20] sm:$0xff] %vm126_vm0, %v644_v34  ;;  %v656_v32 = vadd.f32 %v592_v36, %v1539_v62  ;;  %v657_v11 = vadd.f32 %v593_v35, %v1539_v62  ;;  %v1592_v52 = vadd.f32 %v639_v22, %v1539_v62  ;;  %v658_v29 = vadd.f32 %v594_v49, %v1539_v62 }
 0x2af   :  { %709 = vst.msk [vmem:[#allocation7 + $0x28] sm:$0xff] %vm126_vm0, %v645_v4  ;;  %v597_v55 = vmul.f32 %v839_v59, %v1532_v48  ;;  %v659_v57 = vadd.f32 %v595_v25, %v1539_v62  ;;  %v598_v18 = vmul.f32 %v840_v28, %v1532_v48  ;;  %v660_v10 = vadd.f32 %v596_v53, %v1539_v62 }
 0x2b0   :  { %710 = vst.msk [vmem:[#allocation7 + $0x30] sm:$0xff] %vm126_vm0, %v646_v37  ;;  %v599_v15 = vmul.f32 %v841_v58, %v1532_v48  ;;  %v600_v45 = vmul.f32 %v842_v44, %v1532_v48  ;;  %v601_v9 = vmul.f32 %v843_v14, %v1532_v48  ;;  %v602_v61 = vmul.f32 %v844_v20, %v1532_v48 }
 0x2b1   :  { %711 = vst.msk [vmem:[#allocation7 + $0x38] sm:$0xff] %vm126_vm0, %v647_v40  ;;  %v661_v6 = vadd.f32 %v597_v55, %v1539_v62  ;;  %v662_v31 = vadd.f32 %v598_v18, %v1539_v62  ;;  %v603_v42 = vmul.f32 %v845_v27, %v1532_v48  ;;  %v604_v13 = vmul.f32 %v846_v33, %v1532_v48 }
 0x2b2   :  { %712 = vst.msk [vmem:[#allocation7 + $0x40] sm:$0xff] %vm126_vm0, %v648_v12  ;;  %v663_v24 = vadd.f32 %v599_v15, %v1539_v62  ;;  %v664_v34 = vadd.f32 %v600_v45, %v1539_v62  ;;  %v665_v4 = vadd.f32 %v601_v9, %v1539_v62  ;;  %v666_v37 = vadd.f32 %v602_v61, %v1539_v62 }
 0x2b3   :  { %713 = vst.msk [vmem:[#allocation7 + $0x48] sm:$0xff] %vm126_vm0, %v649_v0  ;;  %v605_v8 = vmul.f32 %v847_v41, %v1532_v48  ;;  %v667_v40 = vadd.f32 %v603_v42, %v1539_v62  ;;  %v606_v47 = vmul.f32 %v848_v51, %v1532_v48  ;;  %v668_v12 = vadd.f32 %v604_v13, %v1539_v62 }
 0x2b4   :  { %714 = vst.msk [vmem:[#allocation7 + $0x50] sm:$0xff] %vm126_vm0, %v650_v50  ;;  %v607_v16 = vmul.f32 %v849_v38, %v1532_v48  ;;  %v608_v17 = vmul.f32 %v850_v54, %v1532_v48  ;;  %v609_v60 = vmul.f32 %v851_v43, %v1532_v48  ;;  %v610_v19 = vmul.f32 %v852_v1, %v1532_v48 }
 0x2b5   :  { %715 = vst.msk [vmem:[#allocation7 + $0x58] sm:$0xff] %vm126_vm0, %v651_v21  ;;  %v669_v0 = vadd.f32 %v605_v8, %v1539_v62  ;;  %v670_v50 = vadd.f32 %v606_v47, %v1539_v62  ;;  %v611_v56 = vmul.f32 %v853_v2, %v1532_v48  ;;  %v612_v36 = vmul.f32 %v854_v30, %v1532_v48 }
 0x2b6   :  { %716 = vst.msk [vmem:[#allocation7 + $0x60] sm:$0xff] %vm126_vm0, %v652_v26  ;;  %v671_v21 = vadd.f32 %v607_v16, %v1539_v62  ;;  %v672_v26 = vadd.f32 %v608_v17, %v1539_v62  ;;  %v613_v35 = vmul.f32 %v855_v3, %v1532_v48 }
 0x2b7   :  { %717 = vst.msk [vmem:[#allocation7 + $0x68] sm:$0xff] %vm126_vm0, %v653_v46  ;;  %v673_v46 = vadd.f32 %v609_v60, %v1539_v62  ;;  %v675_v22 = vadd.f32 %v611_v56, %v1539_v62  ;;  %v676_v49 = vadd.f32 %v612_v36, %v1539_v62 }
 0x2b8   :  { %718 = vst.msk [vmem:[#allocation7 + $0x70] sm:$0xff] %vm126_vm0, %v654_v5  ;;  %v674_v5 = vadd.f32 %v610_v19, %v1539_v62  ;;  %v677_v25 = vadd.f32 %v613_v35, %v1539_v62 }
 0x2b9   :  { %719 = vst.msk [vmem:[#allocation7 + $0x78] sm:$0xff] %vm126_vm0, %v655_v63  ;;  %v856_v63 = vld [vmem:[#allocation2 + $0x130] sm:$0xff] }
 0x2ba   :  { %720 = vst.msk [vmem:[#allocation7 + $0x80] sm:$0xff] %vm126_vm0, %v656_v32  ;;  %v614_v39 = vmul.f32 %v856_v63, %v1532_v48  ;;  %v857_v32 = vld [vmem:[#allocation2 + $0x138] sm:$0xff] }
 0x2bb   :  { %721 = vst.msk [vmem:[#allocation7 + $0x88] sm:$0xff] %vm126_vm0, %v657_v11  ;;  %v615_v7 = vmul.f32 %v857_v32, %v1532_v48  ;;  %v858_v11 = vld [vmem:[#allocation2 + $0x140] sm:$0xff] }
 0x2bc   :  { %722 = vst.msk [vmem:[#allocation7 + $0x90] sm:$0xff] %vm126_vm0, %v658_v29  ;;  %v616_v23 = vmul.f32 %v858_v11, %v1532_v48  ;;  %v678_v53 = vadd.f32 %v614_v39, %v1539_v62  ;;  %v859_v29 = vld [vmem:[#allocation2 + $0x148] sm:$0xff] }
 0x2bd   :  { %723 = vst.msk [vmem:[#allocation7 + $0x98] sm:$0xff] %vm126_vm0, %v659_v57  ;;  %v617_v59 = vmul.f32 %v859_v29, %v1532_v48  ;;  %v679_v55 = vadd.f32 %v615_v7, %v1539_v62  ;;  %v860_v57 = vld [vmem:[#allocation2 + $0x150] sm:$0xff] }
 0x2be   :  { %724 = vst.msk [vmem:[#allocation7 + $0xa0] sm:$0xff] %vm126_vm0, %v660_v10  ;;  %v618_v28 = vmul.f32 %v860_v57, %v1532_v48  ;;  %v680_v18 = vadd.f32 %v616_v23, %v1539_v62  ;;  %v861_v10 = vld [vmem:[#allocation2 + $0x158] sm:$0xff] }
 0x2bf   :  { %725 = vst.msk [vmem:[#allocation7 + $0xa8] sm:$0xff] %vm126_vm0, %v661_v6  ;;  %v619_v58 = vmul.f32 %v861_v10, %v1532_v48  ;;  %v681_v15 = vadd.f32 %v617_v59, %v1539_v62  ;;  %v862_v6 = vld [vmem:[#allocation2 + $0x160] sm:$0xff] }
 0x2c0   :  { %726 = vst.msk [vmem:[#allocation7 + $0xb0] sm:$0xff] %vm126_vm0, %v662_v31  ;;  %v620_v44 = vmul.f32 %v862_v6, %v1532_v48  ;;  %v682_v45 = vadd.f32 %v618_v28, %v1539_v62  ;;  %v863_v31 = vld [vmem:[#allocation2 + $0x168] sm:$0xff] }
 0x2c1   :  { %727 = vst.msk [vmem:[#allocation7 + $0xb8] sm:$0xff] %vm126_vm0, %v663_v24  ;;  %v621_v14 = vmul.f32 %v863_v31, %v1532_v48  ;;  %v683_v9 = vadd.f32 %v619_v58, %v1539_v62  ;;  %v864_v24 = vld [vmem:[#allocation2 + $0x170] sm:$0xff] }
 0x2c2   :  { %728 = vst.msk [vmem:[#allocation7 + $0xc0] sm:$0xff] %vm126_vm0, %v664_v34  ;;  %v622_v20 = vmul.f32 %v864_v24, %v1532_v48  ;;  %v684_v61 = vadd.f32 %v620_v44, %v1539_v62  ;;  %v865_v34 = vld [vmem:[#allocation2 + $0x178] sm:$0xff] }
 0x2c3   :  { %729 = vst.msk [vmem:[#allocation7 + $0xc8] sm:$0xff] %vm126_vm0, %v665_v4  ;;  %v623_v27 = vmul.f32 %v865_v34, %v1532_v48  ;;  %v685_v42 = vadd.f32 %v621_v14, %v1539_v62  ;;  %v866_v4 = vld [vmem:[#allocation2 + $0x180] sm:$0xff] }
 0x2c4   :  { %730 = vst.msk [vmem:[#allocation7 + $0xd0] sm:$0xff] %vm126_vm0, %v666_v37  ;;  %v624_v33 = vmul.f32 %v866_v4, %v1532_v48  ;;  %v686_v13 = vadd.f32 %v622_v20, %v1539_v62  ;;  %v867_v37 = vld [vmem:[#allocation2 + $0x188] sm:$0xff] }
 0x2c5   :  { %731 = vst.msk [vmem:[#allocation7 + $0xd8] sm:$0xff] %vm126_vm0, %v667_v40  ;;  %v625_v41 = vmul.f32 %v867_v37, %v1532_v48  ;;  %v687_v8 = vadd.f32 %v623_v27, %v1539_v62  ;;  %v868_v40 = vld [vmem:[#allocation2 + $0x190] sm:$0xff] }
 0x2c6   :  { %732 = vst.msk [vmem:[#allocation7 + $0xe0] sm:$0xff] %vm126_vm0, %v668_v12  ;;  %v626_v51 = vmul.f32 %v868_v40, %v1532_v48  ;;  %v688_v47 = vadd.f32 %v624_v33, %v1539_v62  ;;  %v869_v12 = vld [vmem:[#allocation2 + $0x198] sm:$0xff] }
 0x2c7   :  { %733 = vst.msk [vmem:[#allocation7 + $0xe8] sm:$0xff] %vm126_vm0, %v669_v0  ;;  %v627_v38 = vmul.f32 %v869_v12, %v1532_v48  ;;  %v689_v16 = vadd.f32 %v625_v41, %v1539_v62  ;;  %v870_v0 = vld [vmem:[#allocation2 + $0x1a0] sm:$0xff] }
 0x2c8   :  { %734 = vst.msk [vmem:[#allocation7 + $0xf0] sm:$0xff] %vm126_vm0, %v670_v50  ;;  %v628_v54 = vmul.f32 %v870_v0, %v1532_v48  ;;  %v690_v17 = vadd.f32 %v626_v51, %v1539_v62  ;;  %v871_v50 = vld [vmem:[#allocation2 + $0x1a8] sm:$0xff] }
 0x2c9   :  { %735 = vst.msk [vmem:[#allocation7 + $0xf8] sm:$0xff] %vm126_vm0, %v671_v21  ;;  %v629_v43 = vmul.f32 %v871_v50, %v1532_v48  ;;  %v691_v60 = vadd.f32 %v627_v38, %v1539_v62  ;;  %v872_v21 = vld [vmem:[#allocation2 + $0x1b0] sm:$0xff] }
 0x2ca   :  { %736 = vst.msk [vmem:[#allocation7 + $0x100] sm:$0xff] %vm126_vm0, %v672_v26  ;;  %v630_v1 = vmul.f32 %v872_v21, %v1532_v48  ;;  %v692_v19 = vadd.f32 %v628_v54, %v1539_v62  ;;  %v873_v26 = vld [vmem:[#allocation2 + $0x1b8] sm:$0xff] }
 0x2cb   :  { %737 = vst.msk [vmem:[#allocation7 + $0x108] sm:$0xff] %vm126_vm0, %v673_v46  ;;  %v631_v2 = vmul.f32 %v873_v26, %v1532_v48  ;;  %v693_v56 = vadd.f32 %v629_v43, %v1539_v62  ;;  %v874_v46 = vld [vmem:[#allocation2 + $0x1c0] sm:$0xff] }
 0x2cc   :  { %738 = vst.msk [vmem:[#allocation7 + $0x110] sm:$0xff] %vm126_vm0, %v674_v5  ;;  %v632_v30 = vmul.f32 %v874_v46, %v1532_v48  ;;  %v694_v36 = vadd.f32 %v630_v1, %v1539_v62  ;;  %v875_v5 = vld [vmem:[#allocation2 + $0x1c8] sm:$0xff] }
 0x2cd   :  { %739 = vst.msk [vmem:[#allocation7 + $0x118] sm:$0xff] %vm126_vm0, %v675_v22  ;;  %v633_v3 = vmul.f32 %v875_v5, %v1532_v48  ;;  %v695_v35 = vadd.f32 %v631_v2, %v1539_v62  ;;  %v876_v22 = vld [vmem:[#allocation2 + $0x1d0] sm:$0xff] }
 0x2ce   :  { %740 = vst.msk [vmem:[#allocation7 + $0x120] sm:$0xff] %vm126_vm0, %v676_v49  ;;  %v634_v63 = vmul.f32 %v876_v22, %v1532_v48  ;;  %v696_v39 = vadd.f32 %v632_v30, %v1539_v62  ;;  %v877_v49 = vld [vmem:[#allocation2 + $0x1d8] sm:$0xff] }
 0x2cf   :  { %741 = vst.msk [vmem:[#allocation7 + $0x128] sm:$0xff] %vm126_vm0, %v677_v25  ;;  %v635_v32 = vmul.f32 %v877_v49, %v1532_v48  ;;  %v697_v7 = vadd.f32 %v633_v3, %v1539_v62  ;;  %v878_v25 = vld [vmem:[#allocation2 + $0x1e0] sm:$0xff] }
 0x2d0   :  { %742 = vst.msk [vmem:[#allocation7 + $0x130] sm:$0xff] %vm126_vm0, %v678_v53  ;;  %v636_v11 = vmul.f32 %v878_v25, %v1532_v48  ;;  %v698_v23 = vadd.f32 %v634_v63, %v1539_v62  ;;  %v879_v53 = vld [vmem:[#allocation2 + $0x1e8] sm:$0xff] }
 0x2d1   :  { %743 = vst.msk [vmem:[#allocation7 + $0x138] sm:$0xff] %vm126_vm0, %v679_v55  ;;  %v637_v29 = vmul.f32 %v879_v53, %v1532_v48  ;;  %v699_v59 = vadd.f32 %v635_v32, %v1539_v62  ;;  %v880_v55 = vld [vmem:[#allocation2 + $0x1f0] sm:$0xff] }
 0x2d2   :  { %744 = vst.msk [vmem:[#allocation7 + $0x140] sm:$0xff] %vm126_vm0, %v680_v18  ;;  %v638_v57 = vmul.f32 %v880_v55, %v1532_v48  ;;  %v700_v28 = vadd.f32 %v636_v11, %v1539_v62 }
 0x2d3   :  { %745 = vst.msk [vmem:[#allocation7 + $0x148] sm:$0xff] %vm126_vm0, %v681_v15  ;;  %v701_v18 = vadd.f32 %v637_v29, %v1539_v62 }
 0x2d4   :  { %746 = vst.msk [vmem:[#allocation7 + $0x150] sm:$0xff] %vm126_vm0, %v682_v45  ;;  %v702_v10 = vadd.f32 %v638_v57, %v1539_v62 }
 0x2d5   :  { %747 = vst.msk [vmem:[#allocation7 + $0x158] sm:$0xff] %vm126_vm0, %v683_v9 }
 0x2d6   :  { %748 = vst.msk [vmem:[#allocation7 + $0x160] sm:$0xff] %vm126_vm0, %v684_v61 }
 0x2d7   :  { %749 = vst.msk [vmem:[#allocation7 + $0x168] sm:$0xff] %vm126_vm0, %v685_v42 }
 0x2d8   :  { %750 = vst.msk [vmem:[#allocation7 + $0x170] sm:$0xff] %vm126_vm0, %v686_v13 }
 0x2d9   :  { %751 = vst.msk [vmem:[#allocation7 + $0x178] sm:$0xff] %vm126_vm0, %v687_v8 }
 0x2da   :  { %752 = vst.msk [vmem:[#allocation7 + $0x180] sm:$0xff] %vm126_vm0, %v688_v47 }
 0x2db   :  { %753 = vst.msk [vmem:[#allocation7 + $0x188] sm:$0xff] %vm126_vm0, %v689_v16 }
 0x2dc   :  { %754 = vst.msk [vmem:[#allocation7 + $0x190] sm:$0xff] %vm126_vm0, %v690_v17 }
 0x2dd   :  { %755 = vst.msk [vmem:[#allocation7 + $0x198] sm:$0xff] %vm126_vm0, %v691_v60 }
 0x2de   :  { %756 = vst.msk [vmem:[#allocation7 + $0x1a0] sm:$0xff] %vm126_vm0, %v692_v19 }
 0x2df   :  { %757 = vst.msk [vmem:[#allocation7 + $0x1a8] sm:$0xff] %vm126_vm0, %v693_v56 }
 0x2e0   :  { %758 = vst.msk [vmem:[#allocation7 + $0x1b0] sm:$0xff] %vm126_vm0, %v694_v36 }
 0x2e1   :  { %759 = vst.msk [vmem:[#allocation7 + $0x1b8] sm:$0xff] %vm126_vm0, %v695_v35 }
 0x2e2   :  { %760 = vst.msk [vmem:[#allocation7 + $0x1c0] sm:$0xff] %vm126_vm0, %v696_v39 }
 0x2e3   :  { %761 = vst.msk [vmem:[#allocation7 + $0x1c8] sm:$0xff] %vm126_vm0, %v697_v7 }
 0x2e4   :  { %762 = vst.msk [vmem:[#allocation7 + $0x1d0] sm:$0xff] %vm126_vm0, %v698_v23 }
 0x2e5   :  { %763 = vst.msk [vmem:[#allocation7 + $0x1d8] sm:$0xff] %vm126_vm0, %v699_v59 }
 0x2e6   :  { %764 = vst.msk [vmem:[#allocation7 + $0x1e0] sm:$0xff] %vm126_vm0, %v700_v28 }
 0x2e7   :  { %765 = vst.msk [vmem:[#allocation7 + $0x1e8] sm:$0xff] %vm126_vm0, %v701_v18 }
 0x2e8   :  { %766 = vst.msk [vmem:[#allocation7 + $0x1f0] sm:$0xff] %vm126_vm0, %v702_v10 }
 0x2e9   :  { %767 = vst.msk [vmem:[#allocation7 + $0x1f8] sm:$0xff] %vm126_vm0, %v1592_v52 }
 0x2ea   :  { %786 = dma.vmem_to_hbm [thread:$0]  %s779_s12, 8192, %s781_s15, [#allocation4], %s960_s17, %s960_s17, %s961_s18  }
 0x2eb   :  { %957 = dma.done.wait [#allocation4], 8192  }
 0x2ec   :  { %958 = vsyncadd [#allocation4], 4294959104 }
 0x2ed   :  { %799 = vsyncpa [#allocation3], 1 }
 0x2ee   :  { %800 = vsyncpa [#allocation6], 1 }
 0x2ef   :  { %801 = vsyncpa [#allocation4], 1 }

</bundles_post_ra>
